<compile_context>
chip_gen: v5e
topology: v5e:2x2
jax: 0.10.0
libtpu: 0.0.40
codegen_flags: <defaults>
</compile_context>

<pallas_src>
import functools
import math

import jax
import jax.numpy as jnp
from jax.experimental import pallas as pl
from jax.experimental.pallas import tpu as pltpu


def _dagnet_kernel(n_layers, x_ref, w1t_ref, b1_ref, *rest):
    wbd_refs = rest[:n_layers]
    bias_refs = rest[n_layers:2 * n_layers]
    out_ref = rest[2 * n_layers]

    # ---- stage 1: nn.Linear(d, d*m1) ----
    x = x_ref[...]                                           # (tile, d), compute dtype
    y = jnp.dot(x, w1t_ref[...], preferred_element_type=jnp.float32)
    y = y + b1_ref[...]                                      # f32 (tile, d*m1)

    # ---- stage 2: A() stack as block-diagonal matmuls ----
    for li in range(n_layers):
        a = jax.nn.sigmoid(y)                                # f32 elementwise (EUP/VPU)
        a = a.astype(wbd_refs[li].dtype)                     # operands-only cast for MXU
        y = jnp.dot(a, wbd_refs[li][...],
                    preferred_element_type=jnp.float32)
        y = y + bias_refs[li][...]                           # one wide f32 add per layer

    # dims[-1] == 1  ->  final y is (tile, d)  (the torch squeeze(dim=2))
    out_ref[...] = y.astype(out_ref.dtype)


def _block_diag(w):
    """(d, din, dout) per-head weights -> (d*din, d*dout) block-diagonal slab."""
    d, din, dout = w.shape
    eye = jnp.eye(d, dtype=w.dtype)
    # result[k*din + i, l*dout + o] = w[k, i, o] * delta(k, l)
    return jnp.einsum("kio,kl->kilo", w, eye).reshape(d * din, d * dout)


def dagnet_forward(x, params, dims, tile_n=512, compute_dtype=jnp.float32):
    d, m1 = dims[0], dims[1]
    n = x.shape[0]
    n_layers = len(dims) - 2
    assert n_layers >= 1 and dims[-1] == 1, \
        "kernel implements the usual non_linear DagNet head (dims[-1] == 1)"

    # --- tiling: tile rows, pad the batch up to a multiple of the tile ---
    tile = max(8, (min(tile_n, max(n, 8)) // 8) * 8)
    n_pad = pl.cdiv(n, tile) * tile
    x_p = x if n_pad == n else jnp.pad(x, ((0, n_pad - n), (0, 0)))
    x_p = x_p.astype(compute_dtype)

    # --- weight prep (host/XLA side, outside the kernel) ---
    w1t = params["w1"].T.astype(compute_dtype)               # (d, d*m1)
    b1r = params["b1"].reshape(1, d * m1).astype(jnp.float32)
    wbd = [_block_diag(params[f"w_{i}"]).astype(compute_dtype)
           for i in range(n_layers)]
    bflat = [params[f"b_{i}"].reshape(1, -1).astype(jnp.float32)
             for i in range(n_layers)]

    in_specs = [
        pl.BlockSpec((tile, d), lambda i: (i, 0)),           # x row tile
        pl.BlockSpec((d, d * m1), lambda i: (0, 0)),         # a1 weight (transposed)
        pl.BlockSpec((1, d * m1), lambda i: (0, 0)),         # a1 bias
    ]
    for li in range(n_layers):
        din, dout = dims[li + 1], dims[li + 2]
        in_specs.append(pl.BlockSpec((d * din, d * dout), lambda i: (0, 0)))
    for li in range(n_layers):
        dout = dims[li + 2]
        in_specs.append(pl.BlockSpec((1, d * dout), lambda i: (0, 0)))

    out_spec = pl.BlockSpec((tile, d), lambda i: (i, 0))
    # TODO(synk): output last dim is d (< 128) -> a few masked stores per tile;
    # negligible vs. the matmuls here, so no lane-dense output reshape is done.

    # --- advisory cost estimate for the XLA scheduler ---
    itemsize = jnp.dtype(compute_dtype).itemsize
    flops = 2 * n_pad * d * d * m1
    transc = 0
    w_bytes = d * d * m1 * itemsize + d * m1 * 4
    for li in range(n_layers):
        din, dout = dims[li + 1], dims[li + 2]
        flops += 2 * n_pad * d * din * dout
        transc += n_pad * d * din
        w_bytes += d * din * d * dout * itemsize + d * dout * 4
    cost = pl.CostEstimate(
        flops=int(flops),
        transcendentals=int(transc),
        bytes_accessed=int(n_pad * d * itemsize + n_pad * d * 4 + w_bytes),
    )

    kernel = functools.partial(_dagnet_kernel, n_layers)
    out = pl.pallas_call(
        kernel,
        out_shape=jax.ShapeDtypeStruct((n_pad, d), jnp.float32),
        grid_spec=pltpu.PrefetchScalarGridSpec(
            num_scalar_prefetch=0,
            grid=(n_pad // tile,),
            in_specs=in_specs,
            out_specs=out_spec,
        ),
        compiler_params=pltpu.CompilerParams(dimension_semantics=("parallel",)),
        cost_estimate=cost,
    )(x_p, w1t, b1r, *wbd, *bflat)

    return out[:n] if n_pad != n else out


def dagnet_ref(x, params, dims):
    """Plain-JAX mirror of the PyTorch forward (for correctness checking)."""
    d, m1 = dims[0], dims[1]
    y = x @ params["w1"].T + params["b1"]                    # nn.Linear
    y = y.reshape(-1, d, m1)                                 # view(-1, d, m1)
    for i in range(len(dims) - 2):                           # A() / L stack
        y = jnp.einsum("nki,kio->nko", jax.nn.sigmoid(y), params[f"w_{i}"])
        y = y + params[f"b_{i}"][None]
    return y[..., 0]                                         # squeeze(dim=2)


def init_params(key, dims):
    """Deterministic init matching the PyTorch module's shapes / bounds."""
    d = dims[0]
    m1 = dims[1]
    n_layers = len(dims) - 2
    keys = jax.random.split(key, 2 + 2 * n_layers)
    params = {}
    bound1 = 1.0 / math.sqrt(d)
    params["w1"] = jax.random.uniform(keys[0], (d * m1, d), jnp.float32, -bound1, bound1)
    params["b1"] = jax.random.uniform(keys[1], (d * m1,), jnp.float32, -bound1, bound1)
    for i in range(n_layers):
        din, dout = dims[i + 1], dims[i + 2]
        bound = 1.0 / math.sqrt(din)
        params[f"w_{i}"] = jax.random.uniform(
            keys[2 + 2 * i], (d, din, dout), jnp.float32, -bound, bound)
        params[f"b_{i}"] = jax.random.uniform(
            keys[3 + 2 * i], (d, dout), jnp.float32, -bound, bound)
    return params
    # TODO(synk): h_func (matrix_exp / trace), l2_reg, get_W and is_weight_nan
    # are host-side regularizers / diagnostics, not part of forward; left out.


if __name__ == "__main__":
    dims = [8, 16, 8, 1]      # d=8, hidden=16 -> 8 -> 1 (non_linear=True)
    batch = 1000              # not a multiple of the tile -> exercises padding

    key = jax.random.PRNGKey(0)
    kx, kp = jax.random.split(key)
    params = init_params(kp, dims)
    x = jax.random.normal(kx, (batch, dims[0]), jnp.float32)

    ref = dagnet_ref(x, params, dims)

    # f32 operands: bitwise-close to the reference.
    out = jax.block_until_ready(dagnet_forward(x, params, dims, tile_n=256))
    assert out.shape == (batch, dims[0])
    assert jnp.allclose(out, ref, atol=1e-5, rtol=1e-5), (
        f"f32 max abs err {jnp.max(jnp.abs(out - ref))}")

    # bf16 operands (f32 accumulation / elementwise): looser tolerance.
    out_bf16 = jax.block_until_ready(
        dagnet_forward(x, params, dims, tile_n=256, compute_dtype=jnp.bfloat16))
    assert out_bf16.shape == (batch, dims[0])
    assert jnp.allclose(out_bf16, ref, atol=5e-2, rtol=5e-2), (
        f"bf16 max abs err {jnp.max(jnp.abs(out_bf16 - ref))}")

    print("KERNEL_OK")
</pallas_src>

<mosaic_0001>
module attributes {stable_mosaic.version = 11 : i64} {
  func.func @_dagnet_kernel(%arg0: i32, %arg1: memref<256x8xf32, #tpu.memory_space<vmem>>, %arg2: memref<8x128xf32, #tpu.memory_space<vmem>>, %arg3: memref<1x128xf32, #tpu.memory_space<vmem>>, %arg4: memref<128x64xf32, #tpu.memory_space<vmem>>, %arg5: memref<64x8xf32, #tpu.memory_space<vmem>>, %arg6: memref<1x64xf32, #tpu.memory_space<vmem>>, %arg7: memref<1x8xf32, #tpu.memory_space<vmem>>, %arg8: memref<256x8xf32, #tpu.memory_space<vmem>>) attributes {dimension_semantics = [#tpu.dimension_semantics<parallel>], iteration_bounds = array<i64: 4>, scalar_prefetch = 0 : i64, scratch_operands = 0 : i64, tpu.core_type = #tpu.core_type<tc>, window_params = [{transform_indices = @transform_0, window_bounds = array<i64: 256, 8>}, {pipeline_mode = #tpu.pipeline_mode<synchronous>, transform_indices = @transform_1, window_bounds = array<i64: 8, 128>}, {pipeline_mode = #tpu.pipeline_mode<synchronous>, transform_indices = @transform_2, window_bounds = array<i64: 1, 128>}, {pipeline_mode = #tpu.pipeline_mode<synchronous>, transform_indices = @transform_3, window_bounds = array<i64: 128, 64>}, {pipeline_mode = #tpu.pipeline_mode<synchronous>, transform_indices = @transform_4, window_bounds = array<i64: 64, 8>}, {pipeline_mode = #tpu.pipeline_mode<synchronous>, transform_indices = @transform_5, window_bounds = array<i64: 1, 64>}, {pipeline_mode = #tpu.pipeline_mode<synchronous>, transform_indices = @transform_6, window_bounds = array<i64: 1, 8>}, {transform_indices = @transform_7, window_bounds = array<i64: 256, 8>}]} {
    %c0 = arith.constant 0 : index
    %c0_0 = arith.constant 0 : index
    %0 = vector.load %arg1[%c0, %c0_0] : memref<256x8xf32, #tpu.memory_space<vmem>>, vector<256x8xf32>
    %c0_1 = arith.constant 0 : index
    %c0_2 = arith.constant 0 : index
    %1 = vector.load %arg2[%c0_1, %c0_2] : memref<8x128xf32, #tpu.memory_space<vmem>>, vector<8x128xf32>
    %cst = arith.constant dense<0.000000e+00> : vector<256x128xf32>
    %2 = tpu.matmul %0, %1, %cst {dimension_numbers = #tpu.dot_dimension_numbers<[1], [0], [0], [1], [0, 0, 1, 1], [], []>} : vector<256x8xf32>, vector<8x128xf32>, vector<256x128xf32> -> vector<256x128xf32>
    %c0_3 = arith.constant 0 : index
    %c0_4 = arith.constant 0 : index
    %3 = vector.load %arg3[%c0_3, %c0_4] : memref<1x128xf32, #tpu.memory_space<vmem>>, vector<1x128xf32>
    %4 = vector.broadcast %3 : vector<1x128xf32> to vector<256x128xf32>
    %5 = arith.addf %2, %4 : vector<256x128xf32>
    %6 = arith.negf %5 : vector<256x128xf32>
    %7 = math.exp %6 : vector<256x128xf32>
    %cst_5 = arith.constant 1.000000e+00 : f32
    %8 = vector.broadcast %cst_5 : f32 to vector<256x128xf32>
    %9 = arith.addf %8, %7 : vector<256x128xf32>
    %10 = arith.divf %8, %9 : vector<256x128xf32>
    %c0_6 = arith.constant 0 : index
    %c0_7 = arith.constant 0 : index
    %11 = vector.load %arg4[%c0_6, %c0_7] : memref<128x64xf32, #tpu.memory_space<vmem>>, vector<128x64xf32>
    %cst_8 = arith.constant dense<0.000000e+00> : vector<256x64xf32>
    %12 = tpu.matmul %10, %11, %cst_8 {dimension_numbers = #tpu.dot_dimension_numbers<[1], [0], [0], [1], [0, 0, 1, 1], [], []>} : vector<256x128xf32>, vector<128x64xf32>, vector<256x64xf32> -> vector<256x64xf32>
    %c0_9 = arith.constant 0 : index
    %c0_10 = arith.constant 0 : index
    %13 = vector.load %arg6[%c0_9, %c0_10] : memref<1x64xf32, #tpu.memory_space<vmem>>, vector<1x64xf32>
    %14 = vector.broadcast %13 : vector<1x64xf32> to vector<256x64xf32>
    %15 = arith.addf %12, %14 : vector<256x64xf32>
    %16 = arith.negf %15 : vector<256x64xf32>
    %17 = math.exp %16 : vector<256x64xf32>
    %cst_11 = arith.constant 1.000000e+00 : f32
    %18 = vector.broadcast %cst_11 : f32 to vector<256x64xf32>
    %19 = arith.addf %18, %17 : vector<256x64xf32>
    %20 = arith.divf %18, %19 : vector<256x64xf32>
    %c0_12 = arith.constant 0 : index
    %c0_13 = arith.constant 0 : index
    %21 = vector.load %arg5[%c0_12, %c0_13] : memref<64x8xf32, #tpu.memory_space<vmem>>, vector<64x8xf32>
    %cst_14 = arith.constant dense<0.000000e+00> : vector<256x8xf32>
    %22 = tpu.matmul %20, %21, %cst_14 {dimension_numbers = #tpu.dot_dimension_numbers<[1], [0], [0], [1], [0, 0, 1, 1], [], []>} : vector<256x64xf32>, vector<64x8xf32>, vector<256x8xf32> -> vector<256x8xf32>
    %c0_15 = arith.constant 0 : index
    %c0_16 = arith.constant 0 : index
    %23 = vector.load %arg7[%c0_15, %c0_16] : memref<1x8xf32, #tpu.memory_space<vmem>>, vector<1x8xf32>
    %24 = vector.broadcast %23 : vector<1x8xf32> to vector<256x8xf32>
    %25 = arith.addf %22, %24 : vector<256x8xf32>
    %c0_17 = arith.constant 0 : index
    %c0_18 = arith.constant 0 : index
    %26 = vector.load %arg8[%c0_17, %c0_18] : memref<256x8xf32, #tpu.memory_space<vmem>>, vector<256x8xf32>
    tpu.vector_store %arg8[%c0_17, %c0_18], %25 {strides = array<i32>} : memref<256x8xf32, #tpu.memory_space<vmem>>, vector<256x8xf32>,
    return
  }
  func.func @transform_0(%arg0: i32) -> (i32, i32) {
    %c0_i32 = arith.constant 0 : i32
    %c0_i32_0 = arith.constant 0 : i32
    return %arg0, %c0_i32 : i32, i32
  }
  func.func @transform_1(%arg0: i32) -> (i32, i32) {
    %c0_i32 = arith.constant 0 : i32
    %c0_i32_0 = arith.constant 0 : i32
    %c0_i32_1 = arith.constant 0 : i32
    return %c0_i32, %c0_i32_0 : i32, i32
  }
  func.func @transform_2(%arg0: i32) -> (i32, i32) {
    %c0_i32 = arith.constant 0 : i32
    %c0_i32_0 = arith.constant 0 : i32
    %c0_i32_1 = arith.constant 0 : i32
    return %c0_i32, %c0_i32_0 : i32, i32
  }
  func.func @transform_3(%arg0: i32) -> (i32, i32) {
    %c0_i32 = arith.constant 0 : i32
    %c0_i32_0 = arith.constant 0 : i32
    %c0_i32_1 = arith.constant 0 : i32
    return %c0_i32, %c0_i32_0 : i32, i32
  }
  func.func @transform_4(%arg0: i32) -> (i32, i32) {
    %c0_i32 = arith.constant 0 : i32
    %c0_i32_0 = arith.constant 0 : i32
    %c0_i32_1 = arith.constant 0 : i32
    return %c0_i32, %c0_i32_0 : i32, i32
  }
  func.func @transform_5(%arg0: i32) -> (i32, i32) {
    %c0_i32 = arith.constant 0 : i32
    %c0_i32_0 = arith.constant 0 : i32
    %c0_i32_1 = arith.constant 0 : i32
    return %c0_i32, %c0_i32_0 : i32, i32
  }
  func.func @transform_6(%arg0: i32) -> (i32, i32) {
    %c0_i32 = arith.constant 0 : i32
    %c0_i32_0 = arith.constant 0 : i32
    %c0_i32_1 = arith.constant 0 : i32
    return %c0_i32, %c0_i32_0 : i32, i32
  }
  func.func @transform_7(%arg0: i32) -> (i32, i32) {
    %c0_i32 = arith.constant 0 : i32
    %c0_i32_0 = arith.constant 0 : i32
    return %arg0, %c0_i32 : i32, i32
  }
}

</mosaic_0001>

<bundles_post_ra>
// kernel: tpu_custom_call.1
= control target key start
LH: loop header
LB: loop body
LE: loop exit
PB: predicated region body
PF: predicated region fallthrough
CT: control target
= control target key end

     0   :  { %s2669_s24 = smov 0   ;;  %s3580_s0 = inlined_call_operand.vmem [shape: f32[1024,8], index: 0, kind: input, shape index: {}]   ;;  %s3581_s1 = inlined_call_operand.vmem [shape: f32[8,128], index: 1, kind: input, shape index: {}]   ;;  %s3582_s2 = inlined_call_operand.vmem [shape: f32[1,128], index: 2, kind: input, shape index: {}]   ;;  %s3583_s3 = inlined_call_operand.vmem [shape: f32[128,64], index: 3, kind: input, shape index: {}]   ;;  %s3584_s4 = inlined_call_operand.vmem [shape: f32[64,8], index: 4, kind: input, shape index: {}]   ;;  %s3585_s5 = inlined_call_operand.vmem [shape: f32[1,64], index: 5, kind: input, shape index: {}]   ;;  %s3586_s6 = inlined_call_operand.vmem [shape: f32[1,8], index: 6, kind: input, shape index: {}]   ;;  %s3587_s7 = inlined_call_operand.vmem [shape: f32[1024,8], index: 7, kind: output, shape index: {}]  }
   0x1 LB: > { %s2188_s25 = sadd.s32 4294967295, %s2627_s24   ;;  %p2192_p0 = scmp.ge.s32.totalorder %s2627_s24, 1  ;;  %s2627_s24 = sphi %s2669_s24, %s17_s24  }
   0x2   : > { %p238_p1 = scmp.lt.s32.totalorder %s2627_s24, 5 }
   0x4   : > { %p239_p2 = pnand %p2192_p0, %p238_p1 }
   0x5   : > { %s2193_s28 = sshll.u32 (!%p239_p2), %s2188_s25, 5 }
   0x6   : > { %242 = sbr.rel (%p239_p2) target bundleno = 719 (0x2cf), region = 48  ;;  %p271_p3 = scmp.lt.s32.totalorder (!%p239_p2), %s2193_s28, 127 }
   0xb   : > { %v314_v0 = vld [vmem:[%s3581_s1] sm:$0xff]  ;;  %s3629_s28 = smov (!%p271_p3, %s2193_s28), 127  ;;  %vm319_vm0 = vcmask 64512   ;;  %v1152_v13 = vld [vmem:[%s3583_s3 + $0x78] sm:$0xff]  ;;  %v1151_v15 = vld [vmem:[%s3583_s3 + $0x70] sm:$0xff] }
   0xc   : > { %431 = vmatpush.msra.mxu0 %v314_v0  ;;  %2327 = vmatpush.msra.mxu3 %v314_v0  ;;  %s2194_s29 = sshll.u32 %s3629_s28, 3  ;;  %v1150_v16 = vld [vmem:[%s3583_s3 + $0x68] sm:$0xff]  ;;  %v1149_v17 = vld [vmem:[%s3583_s3 + $0x60] sm:$0xff]  ;;  %v1148_v18 = vld [vmem:[%s3583_s3 + $0x58] sm:$0xff] }
   0xd   : > { %s2688_s9 = scalar_lea.vmem %s3580_s0, %s2194_s29  ;;  %1157 = vmatpush.msra.mxu1 %v1152_v13  ;;  %v1147_v20 = vld [vmem:[%s3583_s3 + $0x50] sm:$0xff]  ;;  %v1146_v21 = vld [vmem:[%s3583_s3 + $0x48] sm:$0xff]  ;;  %v1145_v22 = vld [vmem:[%s3583_s3 + $0x40] sm:$0xff]  ;;  %s3452_s11 = scalar_lea.vmem %s3587_s7, %s2194_s29 }
   0xe   : > { %v282_v1 = vld [vmem:[%s2688_s9] sm:$0xff]  ;;  %v283_v2 = vld [vmem:[%s2688_s9 + $0x8] sm:$0xff]  ;;  %v284_v3 = vld [vmem:[%s2688_s9 + $0x10] sm:$0xff]  ;;  %2328 = vmatpush.msrb.mxu3 %v1152_v13 }
   0xf   : > { %2197 = vmatmul.msk.f32.vlgmr.msra.gmra.mxu0 %vm319_vm0, %v282_v1  ;;  %v285_v4 = vld [vmem:[%s2688_s9 + $0x18] sm:$0xff]  ;;  %v286_v5 = vld [vmem:[%s2688_s9 + $0x20] sm:$0xff]  ;;  %v287_v6 = vld [vmem:[%s2688_s9 + $0x28] sm:$0xff]  ;;  %1158 = vmatpush.msra.mxu1 %v1151_v15 }
  0x10   : > { %v288_v7 = vld [vmem:[%s2688_s9 + $0x30] sm:$0xff]  ;;  %v289_v8 = vld [vmem:[%s2688_s9 + $0x38] sm:$0xff]  ;;  %v290_v9 = vld [vmem:[%s2688_s9 + $0x40] sm:$0xff]  ;;  %2329 = vmatpush.msrb.mxu3 %v1151_v15 }
  0x11   : > { %v291_v10 = vld [vmem:[%s2688_s9 + $0x48] sm:$0xff]  ;;  %v292_v11 = vld [vmem:[%s2688_s9 + $0x50] sm:$0xff]  ;;  %v293_v12 = vld [vmem:[%s2688_s9 + $0x58] sm:$0xff]  ;;  %1159 = vmatpush.msra.mxu1 %v1150_v16 }
  0x12   : > { %v294_v14 = vld [vmem:[%s2688_s9 + $0x60] sm:$0xff]  ;;  %2330 = vmatpush.msrb.mxu3 %v1150_v16  ;;  %v295_v19 = vld [vmem:[%s2688_s9 + $0x68] sm:$0xff]  ;;  %v1144_v23 = vld [vmem:[%s3583_s3 + $0x38] sm:$0xff] }
  0x13   : > { %1160 = vmatpush.msra.mxu1 %v1149_v17  ;;  %v296_v24 = vld [vmem:[%s2688_s9 + $0x70] sm:$0xff]  ;;  %v1142_v26 = vld [vmem:[%s3583_s3 + $0x28] sm:$0xff]  ;;  %v1141_v27 = vld [vmem:[%s3583_s3 + $0x20] sm:$0xff] }
  0x14   : > { %2331 = vmatpush.msrb.mxu3 %v1149_v17  ;;  %v1143_v25 = vld [vmem:[%s3583_s3 + $0x30] sm:$0xff]  ;;  %v1140_v28 = vld [vmem:[%s3583_s3 + $0x18] sm:$0xff]  ;;  %v1138_v31 = vld [vmem:[%s3583_s3 + $0x8] sm:$0xff] }
  0x15   : > { %1161 = vmatpush.msra.mxu1 %v1148_v18  ;;  %v297_v29 = vld [vmem:[%s2688_s9 + $0x78] sm:$0xff]  ;;  %v1139_v30 = vld [vmem:[%s3583_s3 + $0x10] sm:$0xff]  ;;  %v2770_v32 = vld [vmem:[%s3582_s2] ss:$0 sm:$0xff] }
  0x16   : > { %2332 = vmatpush.msrb.mxu3 %v1148_v18  ;;  %v1137_v33 = vld [vmem:[%s3583_s3] sm:$0xff]  ;;  %v299_v39 = vld [vmem:[%s2688_s9 + $0x88] sm:$0xff]  ;;  %v300_v45 = vld [vmem:[%s2688_s9 + $0x90] sm:$0xff] }
  0x17   : > { %2198 = vmatmul.msk.f32.gmra.mxu0 %vm319_vm0, %v283_v2  ;;  %1162 = vmatpush.msra.mxu1 %v1147_v20  ;;  %v298_v35 = vld [vmem:[%s2688_s9 + $0x80] sm:$0xff]  ;;  %v301_v54 = vld [vmem:[%s2688_s9 + $0x98] sm:$0xff] }
  0x18   : > { %2333 = vmatpush.msrb.mxu3 %v1147_v20 }
  0x19   : > { %1163 = vmatpush.msra.mxu1 %v1146_v21 }
  0x1a   : > { %2334 = vmatpush.msrb.mxu3 %v1146_v21 }
  0x1b   : > { %1164 = vmatpush.msra.mxu1 %v1145_v22 }
  0x1c   : > { %2335 = vmatpush.msrb.mxu3 %v1145_v22 }
  0x1d   : > { %1165 = vmatpush.msra.mxu1 %v1144_v23 }
  0x1e   : > { %2336 = vmatpush.msrb.mxu3 %v1144_v23  ;;  %v303_v23 = vld [vmem:[%s2688_s9 + $0xa8] sm:$0xff] }
  0x1f   : > { %2199 = vmatmul.msk.f32.gmra.mxu0 %vm319_vm0, %v284_v3  ;;  %1166 = vmatpush.msra.mxu1 %v1143_v25 }
  0x20   : > { %2337 = vmatpush.msrb.mxu3 %v1143_v25  ;;  %v309_v25 = vld [vmem:[%s2688_s9 + $0xd8] sm:$0xff] }
  0x21   : > { %1167 = vmatpush.msra.mxu1 %v1142_v26 }
  0x22   : > { %2338 = vmatpush.msrb.mxu3 %v1142_v26 }
  0x23   : > { %1168 = vmatpush.msra.mxu1 %v1141_v27 }
  0x24   : > { %2339 = vmatpush.msrb.mxu3 %v1141_v27 }
  0x25   : > { %1169 = vmatpush.msra.mxu1 %v1140_v28 }
  0x26   : > { %2340 = vmatpush.msrb.mxu3 %v1140_v28 }
  0x27   : > { %2200 = vmatmul.msk.f32.gmra.mxu0 %vm319_vm0, %v285_v4  ;;  %1170 = vmatpush.msra.mxu1 %v1139_v30 }
  0x28   : > { %2341 = vmatpush.msrb.mxu3 %v1139_v30 }
  0x29   : > { %1171 = vmatpush.msra.mxu1 %v1138_v31 }
  0x2a   : > { %2342 = vmatpush.msrb.mxu3 %v1138_v31 }
  0x2b   : > { %1172 = vmatpush.msra.mxu1 %v1137_v33 }
  0x2c   : > { %2343 = vmatpush.msrb.mxu3 %v1137_v33 }
  0x2f   : > { %2201 = vmatmul.msk.f32.gmra.mxu0 %vm319_vm0, %v286_v5 }
  0x37   : > { %2202 = vmatmul.msk.f32.gmra.mxu0 %vm319_vm0, %v287_v6  ;;  %v302_v6 = vld [vmem:[%s2688_s9 + $0xa0] sm:$0xff] }
  0x3f   : > { %2203 = vmatmul.msk.f32.gmra.mxu0 %vm319_vm0, %v288_v7 }
  0x47   : > { %2204 = vmatmul.msk.f32.gmra.mxu0 %vm319_vm0, %v289_v8  ;;  %v308_v8 = vld [vmem:[%s2688_s9 + $0xd0] sm:$0xff] }
  0x48   : > { %2223 = vmatmul.msk.f32.vlgmr.msra.gmra.mxu3 %vm319_vm0, %v308_v8 }
  0x4f   : > { %2205 = vmatmul.msk.f32.gmra.mxu0 %vm319_vm0, %v290_v9 }
  0x50   : > { %2224 = vmatmul.msk.f32.gmra.mxu3 %vm319_vm0, %v309_v25 }
  0x57   : > { %2206 = vmatmul.msk.f32.gmra.mxu0 %vm319_vm0, %v291_v10 }
  0x5f   : > { %2207 = vmatmul.msk.f32.gmra.mxu0 %vm319_vm0, %v292_v11 }
  0x67   : > { %2208 = vmatmul.msk.f32.gmra.mxu0 %vm319_vm0, %v293_v12 }
  0x6f   : > { %2209 = vmatmul.msk.f32.gmra.mxu0 %vm319_vm0, %v294_v14 }
  0x77   : > { %2210 = vmatmul.msk.f32.gmra.mxu0 %vm319_vm0, %v295_v19 }
  0x7f   : > { %2211 = vmatmul.msk.f32.gmra.mxu0 %vm319_vm0, %v296_v24 }
  0x87   : > { %2212 = vmatmul.msk.f32.gmra.mxu0 %vm319_vm0, %v297_v29 }
  0x8c   : > { %v433_v34 = vpop.f32.mrf.mxu0 }
  0x8d   : > { %v434_v36 = vadd.f32 %v2770_v32, %v433_v34 }
  0x8f   : > { %v2229_v37 = vmul.f32 -1.442695, %v434_v36  ;;  %2213 = vmatmul.msk.f32.gmra.mxu0 %vm319_vm0, %v298_v35 }
  0x91   : > { %2363 = vpow2.f32 %v2229_v37 }
  0x94   : > { %v436_v38 = vpop.f32.mrf.mxu0 }
  0x95   : > { %v437_v40 = vadd.f32 %v2770_v32, %v436_v38 }
  0x97   : > { %v2364_v41 = vpop.eup %2363  ;;  %v2230_v42 = vmul.f32 -1.442695, %v437_v40  ;;  %2214 = vmatmul.msk.f32.gmra.mxu0 %vm319_vm0, %v299_v39 }
  0x98   : > { %v625_v43 = vadd.f32 1.0, %v2364_v41  ;;  %v304_v41 = vld [vmem:[%s2688_s9 + $0xb0] sm:$0xff] }
  0x99   : > { %2365 = vpow2.f32 %v2230_v42 }
  0x9a   : > { %2367 = vrcp.f32 %v625_v43  ;;  %v668_v55 = vand.u32 2147483648, %v625_v43  ;;  %v666_v58 = vand.u32 2147483647, %v625_v43  ;;  %vm662_vm2 = vweird.f32 %v625_v43 }
  0x9c   : > { %v439_v44 = vpop.f32.mrf.mxu0  ;;  %v669_v0 = vor.u32 1.1754944e-38, %v668_v55  ;;  %vm667_vm4 = vcmp.eq.f32.partialorder %v666_v58, 8.507059e+37  ;;  %v305_v58 = vld [vmem:[%s2688_s9 + $0xb8] sm:$0xff] }
  0x9d   : > { %v440_v46 = vadd.f32 %v2770_v32, %v439_v44 }
  0x9f   : > { %v2366_v47 = vpop.eup %2365  ;;  %v2231_v48 = vmul.f32 -1.442695, %v440_v46  ;;  %2215 = vmatmul.msk.f32.gmra.mxu0 %vm319_vm0, %v300_v45 }
  0xa0   : > { %v2368_v49 = vpop.eup %2367  ;;  %v626_v50 = vadd.f32 1.0, %v2366_v47 }
  0xa1   : > { %2369 = vpow2.f32 %v2231_v48  ;;  %v658_v51 = vmul.f32 %v2368_v49, %v625_v43  ;;  %vm663_vm1 = vweird.f32 %v2368_v49  ;;  %v310_v43 = vld [vmem:[%s2688_s9 + $0xe0] sm:$0xff] }
  0xa2   : > { %2371 = vrcp.f32 %v626_v50  ;;  %vm664_vm3 = vmor %vm662_vm2, %vm663_vm1  ;;  %v683_v7 = vand.u32 2147483648, %v626_v50  ;;  %v681_v11 = vand.u32 2147483647, %v626_v50  ;;  %vm677_vm6 = vweird.f32 %v626_v50  ;;  %2225 = vmatmul.msk.f32.gmra.mxu3 %vm319_vm0, %v310_v43 }
  0xa3   : > { %v659_v52 = vsub.f32 1.0, %v658_v51 }
  0xa4   : > { %v442_v53 = vpop.f32.mrf.mxu0  ;;  %v684_v17 = vor.u32 1.1754944e-38, %v683_v7  ;;  %vm682_vm8 = vcmp.eq.f32.partialorder %v681_v11, 8.507059e+37  ;;  %v306_v11 = vld [vmem:[%s2688_s9 + $0xc0] sm:$0xff] }
  0xa5   : > { %v443_v56 = vadd.f32 %v2770_v32, %v442_v53  ;;  %v660_v57 = vmul.f32 %v2368_v49, %v659_v52 }
  0xa7   : > { %v2370_v59 = vpop.eup %2369  ;;  %v2232_v60 = vmul.f32 -1.442695, %v443_v56  ;;  %2216 = vmatmul.msk.f32.gmra.mxu0 %vm319_vm0, %v301_v54  ;;  %v661_v61 = vadd.f32 %v2368_v49, %v660_v57 }
  0xa8   : > { %v2372_v62 = vpop.eup %2371  ;;  %v627_v63 = vadd.f32 1.0, %v2370_v59 }
  0xa9   : > { %2373 = vpow2.f32 %v2232_v60  ;;  %v665_v1 = vsel %vm664_vm3, %v2368_v49, %v661_v61  ;;  %v673_v2 = vmul.f32 %v2372_v62, %v626_v50  ;;  %vm678_vm5 = vweird.f32 %v2372_v62  ;;  %v311_v60 = vld [vmem:[%s2688_s9 + $0xe8] sm:$0xff] }
  0xaa   : > { %2375 = vrcp.f32 %v627_v63  ;;  %v670_v3 = vsel %vm667_vm4, %v669_v0, %v665_v1  ;;  %vm679_vm7 = vmor %vm677_vm6, %vm678_vm5  ;;  %v698_v24 = vand.u32 2147483648, %v627_v63  ;;  %v696_v28 = vand.u32 2147483647, %v627_v63  ;;  %2226 = vmatmul.msk.f32.gmra.mxu3 %vm319_vm0, %v311_v60 }
  0xab   : > { %1173 = vmatmul.f32.vlgmr.msra.gmra.mxu1 %v670_v3  ;;  %v674_v4 = vsub.f32 1.0, %v673_v2  ;;  %vm692_vm10 = vweird.f32 %v627_v63 }
  0xac   : > { %v445_v5 = vpop.f32.mrf.mxu0  ;;  %v699_v35 = vor.u32 1.1754944e-38, %v698_v24  ;;  %vm697_vm12 = vcmp.eq.f32.partialorder %v696_v28, 8.507059e+37  ;;  %v307_v28 = vld [vmem:[%s2688_s9 + $0xc8] sm:$0xff] }
  0xad   : > { %v446_v9 = vadd.f32 %v2770_v32, %v445_v5  ;;  %v675_v10 = vmul.f32 %v2372_v62, %v674_v4 }
  0xaf   : > { %v2374_v12 = vpop.eup %2373  ;;  %v2233_v13 = vmul.f32 -1.442695, %v446_v9  ;;  %2217 = vmatmul.msk.f32.gmra.mxu0 %vm319_vm0, %v302_v6  ;;  %v676_v14 = vadd.f32 %v2372_v62, %v675_v10 }
  0xb0   : > { %v2376_v15 = vpop.eup %2375  ;;  %v628_v16 = vadd.f32 1.0, %v2374_v12 }
  0xb1   : > { %2377 = vpow2.f32 %v2233_v13  ;;  %v680_v18 = vsel %vm679_vm7, %v2372_v62, %v676_v14  ;;  %v688_v19 = vmul.f32 %v2376_v15, %v627_v63  ;;  %vm693_vm9 = vweird.f32 %v2376_v15  ;;  %v312_v13 = vld [vmem:[%s2688_s9 + $0xf0] sm:$0xff] }
  0xb2   : > { %2379 = vrcp.f32 %v628_v16  ;;  %v685_v20 = vsel %vm682_vm8, %v684_v17, %v680_v18  ;;  %vm694_vm11 = vmor %vm692_vm10, %vm693_vm9  ;;  %v713_v42 = vand.u32 2147483648, %v628_v16  ;;  %v711_v46 = vand.u32 2147483647, %v628_v16  ;;  %2227 = vmatmul.msk.f32.gmra.mxu3 %vm319_vm0, %v312_v13 }
  0xb3   : > { %1176 = vmatmul.f32.gmra.mxu1 %v685_v20  ;;  %v689_v21 = vsub.f32 1.0, %v688_v19  ;;  %vm707_vm14 = vweird.f32 %v628_v16 }
  0xb4   : > { %v448_v22 = vpop.f32.mrf.mxu0  ;;  %v714_v52 = vor.u32 1.1754944e-38, %v713_v42  ;;  %vm712_vm1 = vcmp.eq.f32.partialorder %v711_v46, 8.507059e+37 }
  0xb5   : > { %v449_v26 = vadd.f32 %v2770_v32, %v448_v22  ;;  %v690_v27 = vmul.f32 %v2376_v15, %v689_v21 }
  0xb7   : > { %v2378_v29 = vpop.eup %2377  ;;  %v2234_v30 = vmul.f32 -1.442695, %v449_v26  ;;  %2218 = vmatmul.msk.f32.gmra.mxu0 %vm319_vm0, %v303_v23  ;;  %v691_v31 = vadd.f32 %v2376_v15, %v690_v27 }
  0xb8   : > { %v2380_v33 = vpop.eup %2379  ;;  %v629_v34 = vadd.f32 1.0, %v2378_v29 }
  0xb9   : > { %2381 = vpow2.f32 %v2234_v30  ;;  %v695_v36 = vsel %vm694_vm11, %v2376_v15, %v691_v31  ;;  %v703_v37 = vmul.f32 %v2380_v33, %v628_v16  ;;  %vm708_vm13 = vweird.f32 %v2380_v33  ;;  %v313_v30 = vld [vmem:[%s2688_s9 + $0xf8] sm:$0xff] }
  0xba   : > { %2383 = vrcp.f32 %v629_v34  ;;  %v700_v38 = vsel %vm697_vm12, %v699_v35, %v695_v36  ;;  %vm709_vm15 = vmor %vm707_vm14, %vm708_vm13  ;;  %v728_v59 = vand.u32 2147483648, %v629_v34  ;;  %v726_v63 = vand.u32 2147483647, %v629_v34  ;;  %2228 = vmatmul.msk.f32.gmra.mxu3 %vm319_vm0, %v313_v30 }
  0xbb   : > { %1179 = vmatmul.f32.gmra.mxu1 %v700_v38  ;;  %v704_v39 = vsub.f32 1.0, %v703_v37  ;;  %vm722_vm3 = vweird.f32 %v629_v34 }
  0xbc   : > { %v451_v40 = vpop.f32.mrf.mxu0  ;;  %v729_v5 = vor.u32 1.1754944e-38, %v728_v59  ;;  %vm727_vm5 = vcmp.eq.f32.partialorder %v726_v63, 8.507059e+37 }
  0xbd   : > { %v452_v44 = vadd.f32 %v2770_v32, %v451_v40  ;;  %v705_v45 = vmul.f32 %v2380_v33, %v704_v39 }
  0xbf   : > { %v2382_v47 = vpop.eup %2381  ;;  %v2235_v48 = vmul.f32 -1.442695, %v452_v44  ;;  %2219 = vmatmul.msk.f32.gmra.mxu0 %vm319_vm0, %v304_v41  ;;  %v706_v49 = vadd.f32 %v2380_v33, %v705_v45 }
  0xc0   : > { %v2384_v50 = vpop.eup %2383  ;;  %v630_v51 = vadd.f32 1.0, %v2382_v47 }
  0xc1   : > { %2385 = vpow2.f32 %v2235_v48  ;;  %v710_v53 = vsel %vm709_vm15, %v2380_v33, %v706_v49  ;;  %v718_v54 = vmul.f32 %v2384_v50, %v629_v34  ;;  %vm723_vm2 = vweird.f32 %v2384_v50 }
  0xc2   : > { %2387 = vrcp.f32 %v630_v51  ;;  %v715_v55 = vsel %vm712_vm1, %v714_v52, %v710_v53  ;;  %vm724_vm4 = vmor %vm722_vm3, %vm723_vm2  ;;  %v743_v12 = vand.u32 2147483648, %v630_v51  ;;  %v741_v16 = vand.u32 2147483647, %v630_v51 }
  0xc3   : > { %1182 = vmatmul.f32.gmra.mxu1 %v715_v55  ;;  %v719_v56 = vsub.f32 1.0, %v718_v54  ;;  %vm737_vm7 = vweird.f32 %v630_v51 }
  0xc4   : > { %v454_v57 = vpop.f32.mrf.mxu0  ;;  %v744_v22 = vor.u32 1.1754944e-38, %v743_v12  ;;  %vm742_vm9 = vcmp.eq.f32.partialorder %v741_v16, 8.507059e+37 }
  0xc5   : > { %v455_v61 = vadd.f32 %v2770_v32, %v454_v57  ;;  %v720_v62 = vmul.f32 %v2384_v50, %v719_v56 }
  0xc7   : > { %v2386_v0 = vpop.eup %2385  ;;  %v2236_v1 = vmul.f32 -1.442695, %v455_v61  ;;  %2220 = vmatmul.msk.f32.gmra.mxu0 %vm319_vm0, %v305_v58  ;;  %v721_v2 = vadd.f32 %v2384_v50, %v720_v62 }
  0xc8   : > { %v2388_v3 = vpop.eup %2387  ;;  %v631_v4 = vadd.f32 1.0, %v2386_v0 }
  0xc9   : > { %2389 = vpow2.f32 %v2236_v1  ;;  %v725_v6 = vsel %vm724_vm4, %v2384_v50, %v721_v2  ;;  %v733_v7 = vmul.f32 %v2388_v3, %v630_v51  ;;  %vm738_vm6 = vweird.f32 %v2388_v3 }
  0xca   : > { %2391 = vrcp.f32 %v631_v4  ;;  %v730_v8 = vsel %vm727_vm5, %v729_v5, %v725_v6  ;;  %vm739_vm8 = vmor %vm737_vm7, %vm738_vm6  ;;  %v758_v29 = vand.u32 2147483648, %v631_v4  ;;  %v756_v34 = vand.u32 2147483647, %v631_v4 }
  0xcb   : > { %1185 = vmatmul.f32.gmra.mxu1 %v730_v8  ;;  %v734_v9 = vsub.f32 1.0, %v733_v7  ;;  %vm752_vm11 = vweird.f32 %v631_v4 }
  0xcc   : > { %v457_v10 = vpop.f32.mrf.mxu0  ;;  %v759_v40 = vor.u32 1.1754944e-38, %v758_v29  ;;  %vm757_vm13 = vcmp.eq.f32.partialorder %v756_v34, 8.507059e+37 }
  0xcd   : > { %v458_v14 = vadd.f32 %v2770_v32, %v457_v10  ;;  %v735_v15 = vmul.f32 %v2388_v3, %v734_v9 }
  0xcf   : > { %v2390_v17 = vpop.eup %2389  ;;  %v2237_v18 = vmul.f32 -1.442695, %v458_v14  ;;  %2221 = vmatmul.msk.f32.gmra.mxu0 %vm319_vm0, %v306_v11  ;;  %v736_v19 = vadd.f32 %v2388_v3, %v735_v15 }
  0xd0   : > { %v2392_v20 = vpop.eup %2391  ;;  %v632_v21 = vadd.f32 1.0, %v2390_v17 }
  0xd1   : > { %2393 = vpow2.f32 %v2237_v18  ;;  %v740_v23 = vsel %vm739_vm8, %v2388_v3, %v736_v19  ;;  %v748_v24 = vmul.f32 %v2392_v20, %v631_v4  ;;  %vm753_vm10 = vweird.f32 %v2392_v20 }
  0xd2   : > { %2395 = vrcp.f32 %v632_v21  ;;  %v745_v25 = vsel %vm742_vm9, %v744_v22, %v740_v23  ;;  %vm754_vm12 = vmor %vm752_vm11, %vm753_vm10  ;;  %v773_v46 = vand.u32 2147483648, %v632_v21  ;;  %v771_v49 = vand.u32 2147483647, %v632_v21 }
  0xd3   : > { %1188 = vmatmul.f32.gmra.mxu1 %v745_v25  ;;  %v749_v26 = vsub.f32 1.0, %v748_v24  ;;  %vm767_vm15 = vweird.f32 %v632_v21 }
  0xd4   : > { %v460_v27 = vpop.f32.mrf.mxu0  ;;  %v774_v55 = vor.u32 1.1754944e-38, %v773_v46  ;;  %vm772_vm2 = vcmp.eq.f32.partialorder %v771_v49, 8.507059e+37 }
  0xd5   : > { %v461_v31 = vadd.f32 %v2770_v32, %v460_v27  ;;  %v750_v33 = vmul.f32 %v2392_v20, %v749_v26 }
  0xd7   : > { %v2394_v35 = vpop.eup %2393  ;;  %v2238_v36 = vmul.f32 -1.442695, %v461_v31  ;;  %2222 = vmatmul.msk.f32.gmra.mxu0 %vm319_vm0, %v307_v28  ;;  %v751_v37 = vadd.f32 %v2392_v20, %v750_v33 }
  0xd8   : > { %v2396_v38 = vpop.eup %2395  ;;  %v633_v39 = vadd.f32 1.0, %v2394_v35 }
  0xd9   : > { %2397 = vpow2.f32 %v2238_v36  ;;  %v755_v41 = vsel %vm754_vm12, %v2392_v20, %v751_v37  ;;  %v763_v42 = vmul.f32 %v2396_v38, %v632_v21  ;;  %vm768_vm14 = vweird.f32 %v2396_v38 }
  0xda   : > { %2399 = vrcp.f32 %v633_v39  ;;  %v760_v43 = vsel %vm757_vm13, %v759_v40, %v755_v41  ;;  %vm769_vm1 = vmor %vm767_vm15, %vm768_vm14  ;;  %v788_v61 = vand.u32 2147483648, %v633_v39  ;;  %v786_v0 = vand.u32 2147483647, %v633_v39 }
  0xdb   : > { %1191 = vmatmul.f32.gmra.mxu1 %v760_v43  ;;  %v764_v44 = vsub.f32 1.0, %v763_v42  ;;  %vm782_vm4 = vweird.f32 %v633_v39 }
  0xdc   : > { %v463_v45 = vpop.f32.mrf.mxu0  ;;  %v789_v6 = vor.u32 1.1754944e-38, %v788_v61  ;;  %vm787_vm6 = vcmp.eq.f32.partialorder %v786_v0, 8.507059e+37 }
  0xdd   : > { %v464_v47 = vadd.f32 %v2770_v32, %v463_v45  ;;  %v765_v48 = vmul.f32 %v2396_v38, %v764_v44 }
  0xdf   : > { %v2398_v50 = vpop.eup %2397  ;;  %v2239_v51 = vmul.f32 -1.442695, %v464_v47  ;;  %v766_v52 = vadd.f32 %v2396_v38, %v765_v48 }
  0xe0   : > { %v2400_v53 = vpop.eup %2399  ;;  %v634_v54 = vadd.f32 1.0, %v2398_v50 }
  0xe1   : > { %2401 = vpow2.f32 %v2239_v51  ;;  %v770_v56 = vsel %vm769_vm1, %v2396_v38, %v766_v52  ;;  %v778_v57 = vmul.f32 %v2400_v53, %v633_v39  ;;  %vm783_vm3 = vweird.f32 %v2400_v53 }
  0xe2   : > { %2403 = vrcp.f32 %v634_v54  ;;  %v775_v58 = vsel %vm772_vm2, %v774_v55, %v770_v56  ;;  %vm784_vm5 = vmor %vm782_vm4, %vm783_vm3  ;;  %v803_v12 = vand.u32 2147483648, %v634_v54  ;;  %v801_v15 = vand.u32 2147483647, %v634_v54 }
  0xe3   : > { %1194 = vmatmul.f32.gmra.mxu1 %v775_v58  ;;  %v779_v59 = vsub.f32 1.0, %v778_v57  ;;  %vm797_vm8 = vweird.f32 %v634_v54 }
  0xe4   : > { %v466_v60 = vpop.f32.mrf.mxu0  ;;  %v804_v21 = vor.u32 1.1754944e-38, %v803_v12  ;;  %vm802_vm10 = vcmp.eq.f32.partialorder %v801_v15, 8.507059e+37 }
  0xe5   : > { %v467_v62 = vadd.f32 %v2770_v32, %v466_v60  ;;  %v780_v63 = vmul.f32 %v2400_v53, %v779_v59 }
  0xe7   : > { %v2402_v1 = vpop.eup %2401  ;;  %v2240_v2 = vmul.f32 -1.442695, %v467_v62  ;;  %v781_v3 = vadd.f32 %v2400_v53, %v780_v63 }
  0xe8   : > { %v2404_v4 = vpop.eup %2403  ;;  %v635_v5 = vadd.f32 1.0, %v2402_v1 }
  0xe9   : > { %2405 = vpow2.f32 %v2240_v2  ;;  %v785_v7 = vsel %vm784_vm5, %v2400_v53, %v781_v3  ;;  %v793_v8 = vmul.f32 %v2404_v4, %v634_v54  ;;  %vm798_vm7 = vweird.f32 %v2404_v4 }
  0xea   : > { %2407 = vrcp.f32 %v635_v5  ;;  %v790_v9 = vsel %vm787_vm6, %v789_v6, %v785_v7  ;;  %vm799_vm9 = vmor %vm797_vm8, %vm798_vm7  ;;  %v818_v27 = vand.u32 2147483648, %v635_v5  ;;  %v816_v30 = vand.u32 2147483647, %v635_v5 }
  0xeb   : > { %1197 = vmatmul.f32.gmra.mxu1 %v790_v9  ;;  %v794_v10 = vsub.f32 1.0, %v793_v8  ;;  %vm812_vm12 = vweird.f32 %v635_v5 }
  0xec   : > { %v469_v11 = vpop.f32.mrf.mxu0  ;;  %v819_v37 = vor.u32 1.1754944e-38, %v818_v27  ;;  %vm817_vm14 = vcmp.eq.f32.partialorder %v816_v30, 8.507059e+37 }
  0xed   : > { %v470_v13 = vadd.f32 %v2770_v32, %v469_v11  ;;  %v795_v14 = vmul.f32 %v2404_v4, %v794_v10 }
  0xef   : > { %v2406_v16 = vpop.eup %2405  ;;  %v2241_v17 = vmul.f32 -1.442695, %v470_v13  ;;  %v796_v18 = vadd.f32 %v2404_v4, %v795_v14 }
  0xf0   : > { %v2408_v19 = vpop.eup %2407  ;;  %v636_v20 = vadd.f32 1.0, %v2406_v16 }
  0xf1   : > { %2409 = vpow2.f32 %v2241_v17  ;;  %v800_v22 = vsel %vm799_vm9, %v2404_v4, %v796_v18  ;;  %v808_v23 = vmul.f32 %v2408_v19, %v635_v5  ;;  %vm813_vm11 = vweird.f32 %v2408_v19 }
  0xf2   : > { %2411 = vrcp.f32 %v636_v20  ;;  %v805_v24 = vsel %vm802_vm10, %v804_v21, %v800_v22  ;;  %vm814_vm13 = vmor %vm812_vm12, %vm813_vm11  ;;  %v833_v43 = vand.u32 2147483648, %v636_v20  ;;  %v831_v46 = vand.u32 2147483647, %v636_v20 }
  0xf3   : > { %1200 = vmatmul.f32.gmra.mxu1 %v805_v24  ;;  %v809_v25 = vsub.f32 1.0, %v808_v23  ;;  %vm827_vm1 = vweird.f32 %v636_v20 }
  0xf4   : > { %v472_v26 = vpop.f32.mrf.mxu0  ;;  %v834_v52 = vor.u32 1.1754944e-38, %v833_v43  ;;  %vm832_vm3 = vcmp.eq.f32.partialorder %v831_v46, 8.507059e+37  ;;  %v1883_v46 = vld [vmem:[%s3584_s4 + $0x28] sm:$0xff] }
  0xf5   : > { %v473_v28 = vadd.f32 %v2770_v32, %v472_v26  ;;  %v810_v29 = vmul.f32 %v2408_v19, %v809_v25 }
  0xf7   : > { %v2410_v31 = vpop.eup %2409  ;;  %v2242_v33 = vmul.f32 -1.442695, %v473_v28  ;;  %v811_v34 = vadd.f32 %v2408_v19, %v810_v29 }
  0xf8   : > { %v2412_v35 = vpop.eup %2411  ;;  %v637_v36 = vadd.f32 1.0, %v2410_v31 }
  0xf9   : > { %2413 = vpow2.f32 %v2242_v33  ;;  %v815_v38 = vsel %vm814_vm13, %v2408_v19, %v811_v34  ;;  %v823_v39 = vmul.f32 %v2412_v35, %v636_v20  ;;  %vm828_vm15 = vweird.f32 %v2412_v35 }
  0xfa   : > { %2415 = vrcp.f32 %v637_v36  ;;  %v820_v40 = vsel %vm817_vm14, %v819_v37, %v815_v38  ;;  %vm829_vm2 = vmor %vm827_vm1, %vm828_vm15  ;;  %v848_v58 = vand.u32 2147483648, %v637_v36  ;;  %v846_v61 = vand.u32 2147483647, %v637_v36 }
  0xfb   : > { %1203 = vmatmul.f32.gmra.mxu1 %v820_v40  ;;  %v824_v41 = vsub.f32 1.0, %v823_v39  ;;  %vm842_vm5 = vweird.f32 %v637_v36  ;;  %v1884_v39 = vld [vmem:[%s3584_s4 + $0x30] sm:$0xff] }
  0xfc   : > { %v475_v42 = vpop.f32.mrf.mxu0  ;;  %v849_v3 = vor.u32 1.1754944e-38, %v848_v58  ;;  %vm847_vm7 = vcmp.eq.f32.partialorder %v846_v61, 8.507059e+37 }
  0xfd   : > { %v476_v44 = vadd.f32 %v2770_v32, %v475_v42  ;;  %v825_v45 = vmul.f32 %v2412_v35, %v824_v41 }
  0xff   : > { %v2414_v47 = vpop.eup %2413  ;;  %v2243_v48 = vmul.f32 -1.442695, %v476_v44  ;;  %v826_v49 = vadd.f32 %v2412_v35, %v825_v45 }
 0x100   : > { %v2416_v50 = vpop.eup %2415  ;;  %v638_v51 = vadd.f32 1.0, %v2414_v47 }
 0x101   : > { %2417 = vpow2.f32 %v2243_v48  ;;  %v830_v53 = vsel %vm829_vm2, %v2412_v35, %v826_v49  ;;  %v838_v54 = vmul.f32 %v2416_v50, %v637_v36  ;;  %vm843_vm4 = vweird.f32 %v2416_v50  ;;  %v1885_v35 = vld [vmem:[%s3584_s4 + $0x38] sm:$0xff] }
 0x102   : > { %2419 = vrcp.f32 %v638_v51  ;;  %v835_v55 = vsel %vm832_vm3, %v834_v52, %v830_v53  ;;  %vm844_vm6 = vmor %vm842_vm5, %vm843_vm4  ;;  %v863_v9 = vand.u32 2147483648, %v638_v51  ;;  %v861_v12 = vand.u32 2147483647, %v638_v51  ;;  %1995 = vmatpush.msra.mxu2 %v1885_v35  ;;  %2344 = vmatpush.msra.mxu3 %v1885_v35 }
 0x103   : > { %1206 = vmatmul.f32.gmra.mxu1 %v835_v55  ;;  %v839_v56 = vsub.f32 1.0, %v838_v54  ;;  %vm857_vm9 = vweird.f32 %v638_v51 }
 0x104   : > { %v478_v57 = vpop.f32.mrf.mxu0  ;;  %v864_v18 = vor.u32 1.1754944e-38, %v863_v9  ;;  %vm862_vm11 = vcmp.eq.f32.partialorder %v861_v12, 8.507059e+37  ;;  %1996 = vmatpush.msra.mxu2 %v1884_v39  ;;  %2345 = vmatpush.msra.mxu3 %v1884_v39 }
 0x105   : > { %v479_v59 = vadd.f32 %v2770_v32, %v478_v57  ;;  %v840_v60 = vmul.f32 %v2416_v50, %v839_v56  ;;  %v1881_v56 = vld [vmem:[%s3584_s4 + $0x18] sm:$0xff] }
 0x106   : > { %1997 = vmatpush.msra.mxu2 %v1883_v46  ;;  %2346 = vmatpush.msra.mxu3 %v1883_v46 }
 0x107   : > { %v2418_v62 = vpop.eup %2417  ;;  %v2244_v63 = vmul.f32 -1.442695, %v479_v59  ;;  %v841_v0 = vadd.f32 %v2416_v50, %v840_v60  ;;  %v1880_v59 = vld [vmem:[%s3584_s4 + $0x10] sm:$0xff] }
 0x108   : > { %v2420_v1 = vpop.eup %2419  ;;  %v639_v2 = vadd.f32 1.0, %v2418_v62 }
 0x109   : > { %2421 = vpow2.f32 %v2244_v63  ;;  %v845_v4 = vsel %vm844_vm6, %v2416_v50, %v841_v0  ;;  %v853_v5 = vmul.f32 %v2420_v1, %v638_v51  ;;  %vm858_vm8 = vweird.f32 %v2420_v1  ;;  %v1882_v50 = vld [vmem:[%s3584_s4 + $0x20] sm:$0xff] }
 0x10a   : > { %2423 = vrcp.f32 %v639_v2  ;;  %v850_v6 = vsel %vm847_vm7, %v849_v3, %v845_v4  ;;  %vm859_vm10 = vmor %vm857_vm9, %vm858_vm8  ;;  %v878_v24 = vand.u32 2147483648, %v639_v2  ;;  %v876_v27 = vand.u32 2147483647, %v639_v2  ;;  %1998 = vmatpush.msra.mxu2 %v1882_v50  ;;  %2347 = vmatpush.msra.mxu3 %v1882_v50  ;;  %v2857_v0 = vld [vmem:[%s3585_s5] ss:$0 sm:$0xff] }
 0x10b   : > { %1209 = vmatmul.f32.gmra.mxu1 %v850_v6  ;;  %v854_v7 = vsub.f32 1.0, %v853_v5  ;;  %vm872_vm13 = vweird.f32 %v639_v2  ;;  %v1878_v6 = vld [vmem:[%s3584_s4] sm:$0xff] }
 0x10c   : > { %v481_v8 = vpop.f32.mrf.mxu0  ;;  %v879_v34 = vor.u32 1.1754944e-38, %v878_v24  ;;  %vm877_vm15 = vcmp.eq.f32.partialorder %v876_v27, 8.507059e+37  ;;  %1999 = vmatpush.msra.mxu2 %v1881_v56  ;;  %2348 = vmatpush.msra.mxu3 %v1881_v56 }
 0x10d   : > { %v482_v10 = vadd.f32 %v2770_v32, %v481_v8  ;;  %v855_v11 = vmul.f32 %v2420_v1, %v854_v7 }
 0x10e   : > { %2000 = vmatpush.msra.mxu2 %v1880_v59  ;;  %2349 = vmatpush.msra.mxu3 %v1880_v59 }
 0x10f   : > { %v2422_v13 = vpop.eup %2421  ;;  %v2245_v14 = vmul.f32 -1.442695, %v482_v10  ;;  %v856_v15 = vadd.f32 %v2420_v1, %v855_v11 }
 0x110   : > { %v2424_v16 = vpop.eup %2423  ;;  %v640_v17 = vadd.f32 1.0, %v2422_v13 }
 0x111   : > { %2425 = vpow2.f32 %v2245_v14  ;;  %v860_v19 = vsel %vm859_vm10, %v2420_v1, %v856_v15  ;;  %v868_v20 = vmul.f32 %v2424_v16, %v639_v2  ;;  %vm873_vm12 = vweird.f32 %v2424_v16  ;;  %v1879_v2 = vld [vmem:[%s3584_s4 + $0x8] sm:$0xff] }
 0x112   : > { %2427 = vrcp.f32 %v640_v17  ;;  %v865_v21 = vsel %vm862_vm11, %v864_v18, %v860_v19  ;;  %vm874_vm14 = vmor %vm872_vm13, %vm873_vm12  ;;  %v893_v42 = vand.u32 2147483648, %v640_v17  ;;  %v891_v45 = vand.u32 2147483647, %v640_v17  ;;  %2001 = vmatpush.msra.mxu2 %v1879_v2  ;;  %2350 = vmatpush.msra.mxu3 %v1879_v2 }
 0x113   : > { %1212 = vmatmul.f32.gmra.mxu1 %v865_v21  ;;  %v869_v22 = vsub.f32 1.0, %v868_v20  ;;  %vm887_vm2 = vweird.f32 %v640_v17 }
 0x114   : > { %v484_v23 = vpop.f32.mrf.mxu0  ;;  %v894_v53 = vor.u32 1.1754944e-38, %v893_v42  ;;  %vm892_vm4 = vcmp.eq.f32.partialorder %v891_v45, 8.507059e+37  ;;  %2002 = vmatpush.msra.mxu2 %v1878_v6  ;;  %2351 = vmatpush.msra.mxu3 %v1878_v6  ;;  %v2908_v6 = vld [vmem:[%s3582_s2] ss:$0 sm:$0xff] }
 0x115   : > { %v485_v25 = vadd.f32 %v2770_v32, %v484_v23  ;;  %v870_v26 = vmul.f32 %v2424_v16, %v869_v22 }
 0x117   : > { %v2426_v28 = vpop.eup %2425  ;;  %v2246_v29 = vmul.f32 -1.442695, %v485_v25  ;;  %v871_v30 = vadd.f32 %v2424_v16, %v870_v26 }
 0x118   : > { %v2428_v31 = vpop.eup %2427  ;;  %v2825_v33 = vadd.f32 1.0, %v2426_v28 }
 0x119   : > { %2429 = vpow2.f32 %v2246_v29  ;;  %v875_v36 = vsel %vm874_vm14, %v2424_v16, %v871_v30  ;;  %v883_v37 = vmul.f32 %v2428_v31, %v640_v17  ;;  %vm888_vm1 = vweird.f32 %v2428_v31 }
 0x11a   : > { %2431 = vrcp.f32 %v2825_v33  ;;  %v880_v38 = vsel %vm877_vm15, %v879_v34, %v875_v36  ;;  %vm889_vm3 = vmor %vm887_vm2, %vm888_vm1  ;;  %v906_v61 = vand.u32 2147483647, %v2825_v33  ;;  %v908_v62 = vand.u32 2147483648, %v2825_v33 }
 0x11b   : > { %1215 = vmatmul.f32.gmra.mxu1 %v880_v38  ;;  %v884_v40 = vsub.f32 1.0, %v883_v37  ;;  %vm902_vm6 = vweird.f32 %v2825_v33 }
 0x11c   : > { %v487_v41 = vpop.f32.mrf.mxu0  ;;  %vm907_vm8 = vcmp.eq.f32.partialorder %v906_v61, 8.507059e+37  ;;  %v909_v10 = vor.u32 1.1754944e-38, %v908_v62 }
 0x11d   : > { %v488_v43 = vadd.f32 %v2770_v32, %v487_v41  ;;  %v885_v44 = vmul.f32 %v2428_v31, %v884_v40 }
 0x11f   : > { %v2430_v47 = vpop.eup %2429  ;;  %v2247_v48 = vmul.f32 -1.442695, %v488_v43  ;;  %v886_v49 = vadd.f32 %v2428_v31, %v885_v44 }
 0x120   : > { %v2432_v51 = vpop.eup %2431  ;;  %v2841_v52 = vadd.f32 1.0, %v2430_v47 }
 0x121   : > { %2433 = vpow2.f32 %v2247_v48  ;;  %v890_v54 = vsel %vm889_vm3, %v2428_v31, %v886_v49  ;;  %v898_v55 = vmul.f32 %v2432_v51, %v2825_v33  ;;  %vm903_vm5 = vweird.f32 %v2432_v51  ;;  %v511_v33 = vpop.f32.mrf.mxu3 }
 0x122   : > { %2435 = vrcp.f32 %v2841_v52  ;;  %v895_v57 = vsel %vm892_vm4, %v894_v53, %v890_v54  ;;  %vm904_vm7 = vmor %vm902_vm6, %vm903_vm5  ;;  %v921_v18 = vand.u32 2147483647, %v2841_v52  ;;  %v923_v19 = vand.u32 2147483648, %v2841_v52 }
 0x123   : > { %1218 = vmatmul.f32.gmra.mxu1 %v895_v57  ;;  %v899_v58 = vsub.f32 1.0, %v898_v55  ;;  %vm917_vm10 = vweird.f32 %v2841_v52  ;;  %v512_v42 = vadd.f32 %v2770_v32, %v511_v33  ;;  %vm1890_vm5 = vcmask 523264  }
 0x124   : > { %v490_v60 = vpop.f32.mrf.mxu0  ;;  %vm922_vm12 = vcmp.eq.f32.partialorder %v921_v18, 8.507059e+37  ;;  %v924_v28 = vor.u32 1.1754944e-38, %v923_v19 }
 0x125   : > { %v491_v63 = vadd.f32 %v2770_v32, %v490_v60  ;;  %v900_v1 = vmul.f32 %v2432_v51, %v899_v58  ;;  %v2255_v53 = vmul.f32 -1.442695, %v512_v42 }
 0x127   : > { %v2434_v3 = vpop.eup %2433  ;;  %v2248_v4 = vmul.f32 -1.442695, %v491_v63  ;;  %v901_v5 = vadd.f32 %v2432_v51, %v900_v1 }
 0x128   : > { %v2436_v7 = vpop.eup %2435  ;;  %v2866_v8 = vadd.f32 1.0, %v2434_v3  ;;  %v1174_v9 = vpop.f32.mrf.mxu1 }
 0x129   : > { %2437 = vpow2.f32 %v2248_v4  ;;  %v1175_v11 = vadd.f32 %v2857_v0, %v1174_v9  ;;  %v905_v12 = vsel %vm904_vm7, %v2432_v51, %v901_v5  ;;  %v913_v13 = vmul.f32 %v2436_v7, %v2841_v52 }
 0x12a   : > { %2439 = vrcp.f32 %v2866_v8  ;;  %v910_v14 = vsel %vm907_vm8, %v909_v10, %v905_v12  ;;  %vm918_vm9 = vweird.f32 %v2436_v7  ;;  %v936_v38 = vand.u32 2147483647, %v2866_v8 }
 0x12b   : > { %v2261_v15 = vmul.f32 -1.442695, %v1175_v11  ;;  %1221 = vmatmul.f32.gmra.mxu1 %v910_v14  ;;  %v914_v16 = vsub.f32 1.0, %v913_v13  ;;  %vm919_vm11 = vmor %vm917_vm10, %vm918_vm9  ;;  %v938_v41 = vand.u32 2147483648, %v2866_v8  ;;  %vm932_vm14 = vweird.f32 %v2866_v8 }
 0x12c   : > { %v493_v17 = vpop.f32.mrf.mxu0  ;;  %vm937_vm15 = vcmp.eq.f32.partialorder %v936_v38, 8.507059e+37 }
 0x12d   : > { %2441 = vpow2.f32 %v2261_v15  ;;  %v494_v20 = vadd.f32 %v2770_v32, %v493_v17  ;;  %v915_v21 = vmul.f32 %v2436_v7, %v914_v16 }
 0x12f   : > { %v2438_v22 = vpop.eup %2437  ;;  %v2249_v23 = vmul.f32 -1.442695, %v494_v20  ;;  %v916_v24 = vadd.f32 %v2436_v7, %v915_v21 }
 0x130   : > { %v2440_v25 = vpop.eup %2439  ;;  %v2875_v26 = vadd.f32 1.0, %v2438_v22  ;;  %v1177_v27 = vpop.f32.mrf.mxu1 }
 0x131   : > { %2443 = vpow2.f32 %v2249_v23  ;;  %v1178_v29 = vadd.f32 %v2857_v0, %v1177_v27  ;;  %v920_v30 = vsel %vm919_vm11, %v2436_v7, %v916_v24  ;;  %v928_v31 = vmul.f32 %v2440_v25, %v2866_v8 }
 0x132   : > { %2445 = vrcp.f32 %v2875_v26  ;;  %v925_v34 = vsel %vm922_vm12, %v924_v28, %v920_v30  ;;  %vm933_vm13 = vweird.f32 %v2440_v25  ;;  %v951_v45 = vand.u32 2147483647, %v2875_v26 }
 0x133   : > { %v2442_v35 = vpop.eup %2441  ;;  %v2262_v36 = vmul.f32 -1.442695, %v1178_v29  ;;  %1224 = vmatmul.f32.gmra.mxu1 %v925_v34  ;;  %v929_v37 = vsub.f32 1.0, %v928_v31  ;;  %v953_v49 = vand.u32 2147483648, %v2875_v26  ;;  %vm934_vm1 = vmor %vm932_vm14, %vm933_vm13  ;;  %vm947_vm2 = vweird.f32 %v2875_v26 }
 0x134   : > { %v2881_v39 = vadd.f32 1.0, %v2442_v35  ;;  %v496_v40 = vpop.f32.mrf.mxu0  ;;  %vm2896_vm3 = vcmp.eq.f32.partialorder %v951_v45, 8.507059e+37 }
 0x135   : > { %2447 = vpow2.f32 %v2262_v36  ;;  %v497_v43 = vadd.f32 %v2770_v32, %v496_v40  ;;  %v930_v44 = vmul.f32 %v2440_v25, %v929_v37  ;;  %v939_v32 = vor.u32 1.1754944e-38, %v938_v41 }
 0x136   : > { %2449 = vrcp.f32 %v2881_v39  ;;  %v1407_v59 = vand.u32 2147483647, %v2881_v39  ;;  %v954_v63 = vor.u32 1.1754944e-38, %v953_v49  ;;  %v1409_v1 = vand.u32 2147483648, %v2881_v39 }
 0x137   : > { %v2444_v46 = vpop.eup %2443  ;;  %v2250_v47 = vmul.f32 -1.442695, %v497_v43  ;;  %v931_v48 = vadd.f32 %v2440_v25, %v930_v44  ;;  %vm1403_vm6 = vweird.f32 %v2881_v39 }
 0x138   : > { %v2446_v50 = vpop.eup %2445  ;;  %v2890_v51 = vadd.f32 1.0, %v2444_v46  ;;  %v1180_v52 = vpop.f32.mrf.mxu1  ;;  %vm2914_vm7 = vcmp.eq.f32.partialorder %v1407_v59, 8.507059e+37  ;;  %v1410_v16 = vor.u32 1.1754944e-38, %v1409_v1 }
 0x139   : > { %2451 = vpow2.f32 %v2250_v47  ;;  %v1181_v54 = vadd.f32 %v2857_v0, %v1180_v52  ;;  %v935_v55 = vsel %vm934_vm1, %v2440_v25, %v931_v48  ;;  %v943_v56 = vmul.f32 %v2446_v50, %v2875_v26  ;;  %v514_v25 = vpop.f32.mrf.mxu3 }
 0x13a   : > { %2453 = vrcp.f32 %v2890_v51  ;;  %v940_v57 = vsel %vm937_vm15, %v939_v32, %v935_v55  ;;  %vm948_vm4 = vweird.f32 %v2446_v50  ;;  %v968_v5 = vand.u32 2147483648, %v2890_v51 }
 0x13b   : > { %v2448_v60 = vpop.eup %2447  ;;  %v2263_v61 = vmul.f32 -1.442695, %v1181_v54  ;;  %1227 = vmatmul.f32.gmra.mxu1 %v940_v57  ;;  %v944_v62 = vsub.f32 1.0, %v943_v56  ;;  %2455 = vpow2.f32 %v2255_v53  ;;  %v966_v11 = vand.u32 2147483647, %v2890_v51  ;;  %vm949_vm8 = vmor %vm947_vm2, %vm948_vm4 }
 0x13c   : > { %v2450_v2 = vpop.eup %2449  ;;  %v2902_v3 = vadd.f32 1.0, %v2448_v60  ;;  %v499_v4 = vpop.f32.mrf.mxu0  ;;  %vm962_vm10 = vweird.f32 %v2890_v51  ;;  %v969_v20 = vor.u32 1.1754944e-38, %v968_v5  ;;  %v515_v41 = vadd.f32 %v2908_v6, %v514_v25 }
 0x13d   : > { %2457 = vpow2.f32 %v2263_v61  ;;  %v500_v7 = vadd.f32 %v2908_v6, %v499_v4  ;;  %v945_v8 = vmul.f32 %v2446_v50, %v944_v62  ;;  %v1399_v9 = vmul.f32 %v2450_v2, %v2881_v39 }
 0x13e   : > { %2459 = vrcp.f32 %v2902_v3  ;;  %vm1404_vm9 = vweird.f32 %v2450_v2  ;;  %v1422_v21 = vand.u32 2147483647, %v2902_v3  ;;  %vm2934_vm11 = vcmp.eq.f32.partialorder %v966_v11, 8.507059e+37 }
 0x13f   : > { %v2452_v12 = vpop.eup %2451  ;;  %v2251_v13 = vmul.f32 -1.442695, %v500_v7  ;;  %v946_v14 = vadd.f32 %v2446_v50, %v945_v8  ;;  %v1400_v15 = vsub.f32 1.0, %v1399_v9  ;;  %v1424_v30 = vand.u32 2147483648, %v2902_v3  ;;  %vm1405_vm13 = vmor %vm1403_vm6, %vm1404_vm9 }
 0x140   : > { %v2919_v17 = vpop.eup %2453  ;;  %v2921_v18 = vadd.f32 1.0, %v2452_v12  ;;  %v1183_v19 = vpop.f32.mrf.mxu1  ;;  %vm1418_vm12 = vweird.f32 %v2902_v3  ;;  %vm2951_vm15 = vcmp.eq.f32.partialorder %v1422_v21, 8.507059e+37  ;;  %v2256_v56 = vmul.f32 -1.442695, %v515_v41 }
 0x141   : > { %2461 = vpow2.f32 %v2251_v13  ;;  %v1184_v22 = vadd.f32 %v2857_v0, %v1183_v19  ;;  %v950_v23 = vsel %vm949_vm8, %v2446_v50, %v946_v14  ;;  %v1401_v24 = vmul.f32 %v2450_v2, %v1400_v15  ;;  %v2456_v27 = vpop.eup %2455  ;;  %v517_v21 = vpop.f32.mrf.mxu3 }
 0x142   : > { %2463 = vrcp.f32 %v2921_v18  ;;  %v955_v28 = vsel %vm2896_vm3, %v954_v63, %v950_v23  ;;  %v958_v26 = vmul.f32 %v2919_v17, %v2890_v51  ;;  %v2939_v35 = vadd.f32 1.0, %v2456_v27 }
 0x143   : > { %v2458_v31 = vpop.eup %2457  ;;  %v2264_v33 = vmul.f32 -1.442695, %v1184_v22  ;;  %1230 = vmatmul.f32.gmra.mxu1 %v955_v28  ;;  %v1402_v34 = vadd.f32 %v2450_v2, %v1401_v24  ;;  %vm963_vm14 = vweird.f32 %v2919_v17  ;;  %v1425_v47 = vor.u32 1.1754944e-38, %v1424_v30 }
 0x144   : > { %v2460_v36 = vpop.eup %2459  ;;  %v2942_v37 = vadd.f32 1.0, %v2458_v31  ;;  %v502_v38 = vpop.f32.mrf.mxu0  ;;  %v959_v40 = vsub.f32 1.0, %v958_v26  ;;  %v981_v55 = vand.u32 2147483647, %v2921_v18  ;;  %vm964_vm2 = vmor %vm962_vm10, %vm963_vm14  ;;  %vm977_vm3 = vweird.f32 %v2921_v18 }
 0x145   : > { %2465 = vpow2.f32 %v2264_v33  ;;  %v503_v42 = vadd.f32 %v2908_v6, %v502_v38  ;;  %v1406_v43 = vsel %vm1405_vm13, %v2450_v2, %v1402_v34  ;;  %v1414_v44 = vmul.f32 %v2460_v36, %v2902_v3 }
 0x146   : > { %2467 = vrcp.f32 %v2942_v37  ;;  %v1411_v39 = vsel %vm2914_vm7, %v1410_v16, %v1406_v43  ;;  %v960_v46 = vmul.f32 %v2919_v17, %v959_v40  ;;  %vm1419_vm1 = vweird.f32 %v2460_v36 }
 0x147   : > { %v2462_v48 = vpop.eup %2461  ;;  %v2252_v49 = vmul.f32 -1.442695, %v503_v42  ;;  %2293 = vmatmul.msk.f32.vlgmr.msra.gmra.mxu2 %vm1890_vm5, %v1411_v39  ;;  %2469 = vrcp.f32 %v2939_v35  ;;  %v1415_v50 = vsub.f32 1.0, %v1414_v44  ;;  %v983_v61 = vand.u32 2147483648, %v2921_v18  ;;  %vm1420_vm4 = vmor %vm1418_vm12, %vm1419_vm1 }
 0x148   : > { %v2464_v52 = vpop.eup %2463  ;;  %v2961_v32 = vadd.f32 1.0, %v2462_v48  ;;  %v1186_v53 = vpop.f32.mrf.mxu1  ;;  %v961_v54 = vadd.f32 %v2919_v17, %v960_v46  ;;  %vm2984_vm7 = vcmp.eq.f32.partialorder %v981_v55, 8.507059e+37  ;;  %v1437_v19 = vand.u32 2147483647, %v2942_v37 }
 0x149   : > { %2471 = vpow2.f32 %v2252_v49  ;;  %v1187_v57 = vadd.f32 %v2857_v0, %v1186_v53  ;;  %v1416_v58 = vmul.f32 %v2460_v36, %v1415_v50  ;;  %v973_v59 = vmul.f32 %v2464_v52, %v2921_v18 }
 0x14a   : > { %2473 = vrcp.f32 %v2961_v32  ;;  %v965_v60 = vsel %vm964_vm2, %v2919_v17, %v961_v54  ;;  %vm978_vm6 = vweird.f32 %v2464_v52  ;;  %v984_v3 = vor.u32 1.1754944e-38, %v983_v61 }
 0x14b   : > { %v2466_v62 = vpop.eup %2465  ;;  %v2265_v63 = vmul.f32 -1.442695, %v1187_v57  ;;  %v970_v1 = vsel %vm2934_vm11, %v969_v20, %v965_v60  ;;  %v1417_v2 = vadd.f32 %v2460_v36, %v1416_v58  ;;  %v974_v4 = vsub.f32 1.0, %v973_v59  ;;  %vm979_vm8 = vmor %vm977_vm3, %vm978_vm6 }
 0x14c   : > { %v2977_v51 = vpop.eup %2467  ;;  %v2979_v5 = vadd.f32 1.0, %v2466_v62  ;;  %1233 = vmatmul.f32.gmra.mxu1 %v970_v1  ;;  %v505_v7 = vpop.f32.mrf.mxu0  ;;  %2475 = vpow2.f32 %v2256_v56  ;;  %v1439_v20 = vand.u32 2147483648, %v2942_v37  ;;  %vm1433_vm9 = vweird.f32 %v2942_v37 }
 0x14d   : > { %v2988_v9 = vpop.eup %2469  ;;  %2477 = vpow2.f32 %v2265_v63  ;;  %v506_v10 = vadd.f32 %v2908_v6, %v505_v7  ;;  %v1421_v11 = vsel %vm1420_vm4, %v2460_v36, %v1417_v2  ;;  %v975_v12 = vmul.f32 %v2464_v52, %v974_v4  ;;  %v520_v63 = vpop.f32.mrf.mxu3 }
 0x14e   : > { %2479 = vrcp.f32 %v2979_v5  ;;  %v1426_v13 = vsel %vm2951_vm15, %v1425_v47, %v1421_v11  ;;  %v1429_v14 = vmul.f32 %v2977_v51, %v2942_v37  ;;  %vm1434_vm10 = vweird.f32 %v2977_v51 }
 0x14f   : > { %v2472_v15 = vpop.eup %2471  ;;  %v2253_v16 = vmul.f32 -1.442695, %v506_v10  ;;  %2294 = vmatmul.msk.f32.gmra.mxu2 %vm1890_vm5, %v1426_v13  ;;  %v976_v17 = vadd.f32 %v2464_v52, %v975_v12  ;;  %vm992_vm11 = vweird.f32 %v2961_v32  ;;  %v996_v26 = vand.u32 2147483647, %v2961_v32  ;;  %vm1435_vm14 = vmor %vm1433_vm9, %vm1434_vm10 }
 0x150   : > { %v2999_v22 = vpop.eup %2473  ;;  %v3001_v23 = vadd.f32 1.0, %v2472_v15  ;;  %v1189_v24 = vpop.f32.mrf.mxu1  ;;  %v1430_v25 = vsub.f32 1.0, %v1429_v14  ;;  %vm3015_vm12 = vcmp.eq.f32.partialorder %v1437_v19, 8.507059e+37  ;;  %v1440_v38 = vor.u32 1.1754944e-38, %v1439_v20 }
 0x151   : > { %2481 = vpow2.f32 %v2253_v16  ;;  %v1190_v27 = vadd.f32 %v2857_v0, %v1189_v24  ;;  %v980_v28 = vsel %vm979_vm8, %v2464_v52, %v976_v17  ;;  %v988_v40 = vmul.f32 %v2999_v22, %v2961_v32 }
 0x152   : > { %v2476_v29 = vpop.eup %2475  ;;  %2483 = vrcp.f32 %v3001_v23  ;;  %v985_v18 = vsel %vm2984_vm7, %v984_v3, %v980_v28  ;;  %v1431_v30 = vmul.f32 %v2977_v51, %v1430_v25  ;;  %vm993_vm13 = vweird.f32 %v2999_v22 }
 0x153   : > { %v2478_v33 = vpop.eup %2477  ;;  %v2266_v34 = vmul.f32 -1.442695, %v1190_v27  ;;  %v3019_v36 = vadd.f32 1.0, %v2476_v29  ;;  %v998_v45 = vand.u32 2147483648, %v2961_v32  ;;  %v989_v46 = vsub.f32 1.0, %v988_v40  ;;  %vm994_vm2 = vmor %vm992_vm11, %vm993_vm13 }
 0x154   : > { %v2480_v41 = vpop.eup %2479  ;;  %v3023_v42 = vadd.f32 1.0, %v2478_v33  ;;  %1236 = vmatmul.f32.gmra.mxu1 %v985_v18  ;;  %v508_v43 = vpop.f32.mrf.mxu0  ;;  %v1432_v44 = vadd.f32 %v2977_v51, %v1431_v30  ;;  %v518_v47 = vadd.f32 %v2908_v6, %v517_v21  ;;  %vm3036_vm15 = vcmp.eq.f32.partialorder %v996_v26, 8.507059e+37 }
 0x155   : > { %2485 = vpow2.f32 %v2266_v34  ;;  %v509_v39 = vadd.f32 %v2908_v6, %v508_v43  ;;  %v1444_v50 = vmul.f32 %v2480_v41, %v2979_v5  ;;  %v990_v37 = vmul.f32 %v2999_v22, %v989_v46 }
 0x156   : > { %2487 = vrcp.f32 %v3023_v42  ;;  %v1436_v48 = vsel %vm1435_vm14, %v2977_v51, %v1432_v44  ;;  %v999_v55 = vor.u32 1.1754944e-38, %v998_v45  ;;  %v2257_v59 = vmul.f32 -1.442695, %v518_v47  ;;  %v523_v44 = vpop.f32.mrf.mxu3 }
 0x157   : > { %v2482_v52 = vpop.eup %2481  ;;  %v2254_v53 = vmul.f32 -1.442695, %v509_v39  ;;  %v1441_v54 = vsel %vm3015_vm12, %v1440_v38, %v1436_v48  ;;  %2489 = vrcp.f32 %v3019_v36  ;;  %v1445_v60 = vsub.f32 1.0, %v1444_v50 }
 0x158   : > { %v3044_v56 = vpop.eup %2483  ;;  %v3046_v57 = vadd.f32 1.0, %v2482_v52  ;;  %2295 = vmatmul.msk.f32.gmra.mxu2 %vm1890_vm5, %v1441_v54  ;;  %v1192_v58 = vpop.f32.mrf.mxu1  ;;  %v991_v62 = vadd.f32 %v2999_v22, %v990_v37  ;;  %vm1448_vm1 = vweird.f32 %v2979_v5  ;;  %vm1449_vm3 = vweird.f32 %v2480_v41 }
 0x159   : > { %2491 = vpow2.f32 %v2254_v53  ;;  %v1193_v61 = vadd.f32 %v2857_v0, %v1192_v58  ;;  %v1446_v1 = vmul.f32 %v2480_v41, %v1445_v60  ;;  %v1452_v2 = vand.u32 2147483647, %v2979_v5  ;;  %vm1450_vm4 = vmor %vm1448_vm1, %vm1449_vm3 }
 0x15a   : > { %v1454_v4 = vand.u32 2147483648, %v2979_v5  ;;  %v995_v8 = vsel %vm994_vm2, %v2999_v22, %v991_v62  ;;  %2493 = vpow2.f32 %v2257_v59  ;;  %v1003_v10 = vmul.f32 %v3044_v56, %v3001_v23 }
 0x15b   : > { %v2486_v51 = vpop.eup %2485  ;;  %v2267_v7 = vmul.f32 -1.442695, %v1193_v61  ;;  %2495 = vrcp.f32 %v3046_v57  ;;  %v1000_v12 = vsel %vm3036_vm15, %v999_v55, %v995_v8  ;;  %v1447_v13 = vadd.f32 %v2480_v41, %v1446_v1 }
 0x15c   : > { %v3062_v11 = vpop.eup %2487  ;;  %v3065_v32 = vadd.f32 1.0, %v2486_v51  ;;  %1239 = vmatmul.f32.gmra.mxu1 %v1000_v12  ;;  %vm1453_vm6 = vcmp.eq.f32.partialorder %v1452_v2, 8.507059e+37  ;;  %v1455_v3 = vor.u32 1.1754944e-38, %v1454_v4  ;;  %v1004_v14 = vsub.f32 1.0, %v1003_v10 }
 0x15d   : > { %2497 = vpow2.f32 %v2267_v7  ;;  %v3072_v15 = vpop.eup %2489  ;;  %v1451_v16 = vsel %vm1450_vm4, %v2480_v41, %v1447_v13  ;;  %vm1008_vm7 = vweird.f32 %v3044_v56  ;;  %v1011_v17 = vand.u32 2147483647, %v3001_v23 }
 0x15e   : > { %2499 = vrcp.f32 %v3065_v32  ;;  %v1456_v20 = vsel %vm1453_vm6, %v1455_v3, %v1451_v16  ;;  %v1005_v21 = vmul.f32 %v3044_v56, %v1004_v14  ;;  %v1013_v22 = vand.u32 2147483648, %v3001_v23 }
 0x15f   : > { %v2492_v19 = vpop.eup %2491  ;;  %v521_v5 = vadd.f32 %v2908_v6, %v520_v63  ;;  %vm1007_vm8 = vweird.f32 %v3001_v23  ;;  %vm3084_vm9 = vcmp.eq.f32.partialorder %v1011_v17, 8.507059e+37  ;;  %v1459_v28 = vmul.f32 %v3062_v11, %v3023_v42 }
 0x160   : > { %v3080_v24 = vadd.f32 1.0, %v2492_v19  ;;  %2296 = vmatmul.msk.f32.gmra.mxu2 %vm1890_vm5, %v1456_v20  ;;  %v1195_v25 = vpop.f32.mrf.mxu1  ;;  %v2494_v26 = vpop.eup %2493  ;;  %v1006_v18 = vadd.f32 %v3044_v56, %v1005_v21  ;;  %v1014_v30 = vor.u32 1.1754944e-38, %v1013_v22  ;;  %vm1009_vm10 = vmor %vm1007_vm8, %vm1008_vm7  ;;  %vm1464_vm11 = vweird.f32 %v3062_v11 }
 0x161   : > { %v1196_v29 = vadd.f32 %v2857_v0, %v1195_v25  ;;  %v2258_v31 = vmul.f32 -1.442695, %v521_v5  ;;  %v3092_v33 = vpop.eup %2495  ;;  %v3095_v34 = vadd.f32 1.0, %v2494_v26  ;;  %v1460_v23 = vsub.f32 1.0, %v1459_v28  ;;  %v526_v21 = vpop.f32.mrf.mxu3 }
 0x162   : > { %2501 = vrcp.f32 %v3080_v24  ;;  %v1010_v41 = vsel %vm1009_vm10, %v3044_v56, %v1006_v18  ;;  %v1467_v43 = vand.u32 2147483647, %v3023_v42  ;;  %v1469_v48 = vand.u32 2147483648, %v3023_v42 }
 0x163   : > { %v2498_v38 = vpop.eup %2497  ;;  %v2268_v40 = vmul.f32 -1.442695, %v1196_v29  ;;  %2503 = vpow2.f32 %v2258_v31  ;;  %v1015_v46 = vsel %vm3084_vm9, %v1014_v30, %v1010_v41  ;;  %v1461_v47 = vmul.f32 %v3062_v11, %v1460_v23 }
 0x164   : > { %v3102_v45 = vpop.eup %2499  ;;  %v3104_v39 = vadd.f32 1.0, %v2498_v38  ;;  %2505 = vrcp.f32 %v3095_v34  ;;  %1242 = vmatmul.f32.vlgmr.msrb.gmra.mxu3 %v1015_v46  ;;  %v1018_v49 = vmul.f32 %v3092_v33, %v3046_v57  ;;  %vm1463_vm12 = vweird.f32 %v3023_v42 }
 0x165   : > { %2507 = vpow2.f32 %v2268_v40  ;;  %v1462_v50 = vadd.f32 %v3062_v11, %v1461_v47  ;;  %vm1468_vm13 = vcmp.eq.f32.partialorder %v1467_v43, 8.507059e+37  ;;  %vm1465_vm14 = vmor %vm1463_vm12, %vm1464_vm11  ;;  %v1470_v52 = vor.u32 1.1754944e-38, %v1469_v48 }
 0x166   : > { %2509 = vrcp.f32 %v3104_v39  ;;  %v1019_v53 = vsub.f32 1.0, %v1018_v49  ;;  %v1026_v54 = vand.u32 2147483647, %v3046_v57  ;;  %v1028_v37 = vand.u32 2147483648, %v3046_v57 }
 0x167   : > { %v1466_v56 = vsel %vm1465_vm14, %v3062_v11, %v1462_v50  ;;  %vm1022_vm15 = vweird.f32 %v3046_v57  ;;  %v524_v59 = vadd.f32 %v2908_v6, %v523_v44  ;;  %v1474_v42 = vmul.f32 %v3102_v45, %v3065_v32 }
 0x168   : > { %v3120_v55 = vpop.eup %2501  ;;  %v1198_v58 = vpop.f32.mrf.mxu1  ;;  %v1471_v61 = vsel %vm1468_vm13, %v1470_v52, %v1466_v56  ;;  %v1020_v63 = vmul.f32 %v3092_v33, %v1019_v53  ;;  %vm1023_vm1 = vweird.f32 %v3092_v33  ;;  %vm3133_vm2 = vcmp.eq.f32.partialorder %v1026_v54, 8.507059e+37 }
 0x169   : > { %v2504_v60 = vpop.eup %2503  ;;  %v1199_v62 = vadd.f32 %v2857_v0, %v1198_v58  ;;  %2297 = vmatmul.msk.f32.gmra.mxu2 %vm1890_vm5, %v1471_v61  ;;  %v1029_v4 = vor.u32 1.1754944e-38, %v1028_v37  ;;  %v1475_v51 = vsub.f32 1.0, %v1474_v42  ;;  %vm1478_vm3 = vweird.f32 %v3065_v32  ;;  %vm1024_vm4 = vmor %vm1022_vm15, %vm1023_vm1 }
 0x16a   : > { %v3130_v1 = vpop.eup %2505  ;;  %v1021_v10 = vadd.f32 %v3092_v33, %v1020_v63  ;;  %v2259_v11 = vmul.f32 -1.442695, %v524_v59  ;;  %v1482_v12 = vand.u32 2147483647, %v3065_v32  ;;  %vm1479_vm6 = vweird.f32 %v3102_v45 }
 0x16b   : > { %v2508_v7 = vpop.eup %2507  ;;  %v2269_v8 = vmul.f32 -1.442695, %v1199_v62  ;;  %v1476_v14 = vmul.f32 %v3102_v45, %v1475_v51  ;;  %v1484_v16 = vand.u32 2147483648, %v3065_v32  ;;  %v3149_v17 = vadd.f32 1.0, %v2504_v60  ;;  %vm1480_vm8 = vmor %vm1478_vm3, %vm1479_vm6 }
 0x16c   : > { %v3140_v13 = vpop.eup %2509  ;;  %v3142_v3 = vadd.f32 1.0, %v2508_v7  ;;  %v1025_v19 = vsel %vm1024_vm4, %v3092_v33, %v1021_v10  ;;  %v1033_v20 = vmul.f32 %v3120_v55, %v3080_v24  ;;  %vm1483_vm7 = vcmp.eq.f32.partialorder %v1482_v12, 8.507059e+37 }
 0x16d   : > { %2511 = vpow2.f32 %v2269_v8  ;;  %v1030_v57 = vsel %vm3133_vm2, %v1029_v4, %v1025_v19  ;;  %v1477_v22 = vadd.f32 %v3102_v45, %v1476_v14  ;;  %v1485_v5 = vor.u32 1.1754944e-38, %v1484_v16 }
 0x16e   : > { %2513 = vrcp.f32 %v3142_v3  ;;  %1245 = vmatmul.f32.gmra.mxu3 %v1030_v57  ;;  %v1034_v25 = vsub.f32 1.0, %v1033_v20  ;;  %vm1038_vm9 = vweird.f32 %v3120_v55  ;;  %v1041_v26 = vand.u32 2147483647, %v3080_v24 }
 0x16f   : > { %2515 = vpow2.f32 %v2259_v11  ;;  %v1481_v27 = vsel %vm1480_vm8, %v3102_v45, %v1477_v22  ;;  %v1043_v29 = vand.u32 2147483648, %v3080_v24  ;;  %v527_v18 = vadd.f32 %v2908_v6, %v526_v21 }
 0x170   : > { %v1201_v28 = vpop.f32.mrf.mxu1  ;;  %v1486_v30 = vsel %vm1483_vm7, %v1485_v5, %v1481_v27  ;;  %v1035_v33 = vmul.f32 %v3120_v55, %v1034_v25  ;;  %v1489_v32 = vmul.f32 %v3140_v13, %v3104_v39  ;;  %2517 = vrcp.f32 %v3149_v17 }
 0x171   : > { %v1202_v31 = vadd.f32 %v2857_v0, %v1201_v28  ;;  %2298 = vmatmul.msk.f32.gmra.mxu2 %vm1890_vm5, %v1486_v30  ;;  %vm1037_vm10 = vweird.f32 %v3080_v24  ;;  %vm3172_vm11 = vcmp.eq.f32.partialorder %v1041_v26, 8.507059e+37  ;;  %v1044_v38 = vor.u32 1.1754944e-38, %v1043_v29 }
 0x172   : > { %v1036_v41 = vadd.f32 %v3120_v55, %v1035_v33  ;;  %v2260_v43 = vmul.f32 -1.442695, %v527_v18  ;;  %v1490_v44 = vsub.f32 1.0, %v1489_v32  ;;  %vm1039_vm12 = vmor %vm1037_vm10, %vm1038_vm9  ;;  %vm1494_vm13 = vweird.f32 %v3140_v13 }
 0x173   : > { %v2512_v6 = vpop.eup %2511  ;;  %v2270_v40 = vmul.f32 -1.442695, %v1202_v31  ;;  %v1497_v24 = vand.u32 2147483647, %v3104_v39  ;;  %v1499_v47 = vand.u32 2147483648, %v3104_v39  ;;  %v1048_v52 = vmul.f32 %v2988_v9, %v2939_v35 }
 0x174   : > { %v3177_v45 = vpop.eup %2513  ;;  %v3179_v46 = vadd.f32 1.0, %v2512_v6  ;;  %v1040_v49 = vsel %vm1039_vm12, %v3120_v55, %v1036_v41  ;;  %v1491_v50 = vmul.f32 %v3140_v13, %v1490_v44  ;;  %vm1493_vm14 = vweird.f32 %v3104_v39 }
 0x175   : > { %v2516_v48 = vpop.eup %2515  ;;  %2519 = vpow2.f32 %v2270_v40  ;;  %v1045_v54 = vsel %vm3172_vm11, %v1044_v38, %v1040_v49  ;;  %vm1498_vm15 = vcmp.eq.f32.partialorder %v1497_v24, 8.507059e+37  ;;  %v1049_v56 = vsub.f32 1.0, %v1048_v52  ;;  %vm1495_vm2 = vmor %vm1493_vm14, %vm1494_vm13 }
 0x176   : > { %2521 = vrcp.f32 %v3179_v46  ;;  %v3191_v53 = vadd.f32 1.0, %v2516_v48  ;;  %1248 = vmatmul.f32.gmra.mxu3 %v1045_v54  ;;  %v1492_v37 = vadd.f32 %v3140_v13, %v1491_v50  ;;  %vm1052_vm1 = vweird.f32 %v2939_v35  ;;  %v3198_v55 = vpop.eup %2517 }
 0x177   : > { %v1500_v58 = vor.u32 1.1754944e-38, %v1499_v47  ;;  %vm1053_vm3 = vweird.f32 %v2988_v9  ;;  %v1056_v42 = vand.u32 2147483647, %v2939_v35  ;;  %v1058_v39 = vand.u32 2147483648, %v2939_v35 }
 0x178   : > { %v1204_v59 = vpop.f32.mrf.mxu1  ;;  %v1496_v60 = vsel %vm1495_vm2, %v3140_v13, %v1492_v37  ;;  %v1050_v62 = vmul.f32 %v2988_v9, %v1049_v56  ;;  %v1504_v63 = vmul.f32 %v3177_v45, %v3142_v3  ;;  %2523 = vpow2.f32 %v2260_v43  ;;  %vm3210_vm4 = vmor %vm1052_vm1, %vm1053_vm3 }
 0x179   : > { %v1205_v61 = vadd.f32 %v2857_v0, %v1204_v59  ;;  %v1501_v2 = vsel %vm1498_vm15, %v1500_v58, %v1496_v60  ;;  %v1059_v51 = vor.u32 1.1754944e-38, %v1058_v39  ;;  %vm1057_vm6 = vcmp.eq.f32.partialorder %v1056_v42, 8.507059e+37 }
 0x17a   : > { %2299 = vmatmul.msk.f32.gmra.mxu2 %vm1890_vm5, %v1501_v2  ;;  %v1051_v8 = vadd.f32 %v2988_v9, %v1050_v62  ;;  %v1505_v10 = vsub.f32 1.0, %v1504_v63  ;;  %2525 = vrcp.f32 %v3191_v53  ;;  %vm1509_vm7 = vweird.f32 %v3177_v45 }
 0x17b   : > { %v2520_v7 = vpop.eup %2519  ;;  %v2271_v35 = vmul.f32 -1.442695, %v1205_v61  ;;  %v1514_v13 = vand.u32 2147483648, %v3142_v3  ;;  %v1512_v19 = vand.u32 2147483647, %v3142_v3  ;;  %v1063_v20 = vmul.f32 %v3072_v15, %v3019_v36 }
 0x17c   : > { %v3216_v11 = vpop.eup %2521  ;;  %v3219_v12 = vadd.f32 1.0, %v2520_v7  ;;  %v1055_v14 = vsel %vm3210_vm4, %v2988_v9, %v1051_v8  ;;  %v1506_v16 = vmul.f32 %v3177_v45, %v1505_v10  ;;  %vm1508_vm8 = vweird.f32 %v3142_v3 }
 0x17d   : > { %v1060_v21 = vsel %vm1057_vm6, %v1059_v51, %v1055_v14  ;;  %v1515_v57 = vor.u32 1.1754944e-38, %v1514_v13  ;;  %v1064_v5 = vsub.f32 1.0, %v1063_v20  ;;  %vm1067_vm9 = vweird.f32 %v3019_v36  ;;  %vm1510_vm10 = vmor %vm1508_vm8, %vm1509_vm7 }
 0x17e   : > { %2527 = vrcp.f32 %v3219_v12  ;;  %1251 = vmatmul.f32.gmra.mxu3 %v1060_v21  ;;  %v1507_v22 = vadd.f32 %v3177_v45, %v1506_v16  ;;  %v2524_v9 = vpop.eup %2523  ;;  %vm1068_vm11 = vweird.f32 %v3072_v15  ;;  %v1071_v27 = vand.u32 2147483647, %v3019_v36 }
 0x17f   : > { %2529 = vpow2.f32 %v2271_v35  ;;  %v1073_v28 = vand.u32 2147483648, %v3019_v36  ;;  %v1519_v3 = vmul.f32 %v3216_v11, %v3179_v46  ;;  %vm1513_vm12 = vcmp.eq.f32.partialorder %v1512_v19, 8.507059e+37  ;;  %vm3246_vm13 = vmor %vm1067_vm9, %vm1068_vm11 }
 0x180   : > { %v1207_v25 = vpop.f32.mrf.mxu1  ;;  %v1511_v26 = vsel %vm1510_vm10, %v3177_v45, %v1507_v22  ;;  %v1065_v18 = vmul.f32 %v3072_v15, %v1064_v5  ;;  %v3244_v30 = vpop.eup %2525  ;;  %vm1523_vm14 = vweird.f32 %v3179_v46  ;;  %vm1072_vm15 = vcmp.eq.f32.partialorder %v1071_v27, 8.507059e+37 }
 0x181   : > { %v1208_v29 = vadd.f32 %v2857_v0, %v1207_v25  ;;  %v1516_v31 = vsel %vm1513_vm12, %v1515_v57, %v1511_v26  ;;  %v1074_v32 = vor.u32 1.1754944e-38, %v1073_v28  ;;  %v1520_v23 = vsub.f32 1.0, %v1519_v3  ;;  %v3337_v25 = vld [vmem:[%s3585_s5] ss:$0 sm:$0xff] }
 0x182   : > { %2300 = vmatmul.msk.f32.gmra.mxu2 %vm1890_vm5, %v1516_v31  ;;  %v1066_v38 = vadd.f32 %v3072_v15, %v1065_v18  ;;  %vm1524_vm1 = vweird.f32 %v3216_v11  ;;  %v1527_v41 = vand.u32 2147483647, %v3179_v46  ;;  %v1529_v43 = vand.u32 2147483648, %v3179_v46 }
 0x183   : > { %v2272_v36 = vmul.f32 -1.442695, %v1208_v29  ;;  %v1521_v40 = vmul.f32 %v3216_v11, %v1520_v23  ;;  %v1078_v44 = vmul.f32 %v3130_v1, %v3095_v34  ;;  %vm1082_vm2 = vweird.f32 %v3095_v34  ;;  %vm1525_vm4 = vmor %vm1523_vm14, %vm1524_vm1 }
 0x184   : > { %v3254_v6 = vpop.eup %2527  ;;  %v1070_v24 = vsel %vm3246_vm13, %v3072_v15, %v1066_v38  ;;  %vm1083_vm3 = vweird.f32 %v3130_v1  ;;  %v1530_v50 = vor.u32 1.1754944e-38, %v1529_v43  ;;  %v1086_v54 = vand.u32 2147483647, %v3095_v34 }
 0x185   : > { %v2530_v45 = vpop.eup %2529  ;;  %2531 = vpow2.f32 %v2272_v36  ;;  %v1075_v48 = vsel %vm1072_vm15, %v1074_v32, %v1070_v24  ;;  %v1522_v49 = vadd.f32 %v3216_v11, %v1521_v40  ;;  %v1079_v52 = vsub.f32 1.0, %v1078_v44  ;;  %vm3288_vm8 = vmor %vm1082_vm2, %vm1083_vm3 }
 0x186   : > { %v3266_v47 = vadd.f32 1.0, %v2530_v45  ;;  %1254 = vmatmul.f32.gmra.mxu3 %v1075_v48  ;;  %v1088_v15 = vand.u32 2147483648, %v3095_v34  ;;  %v1534_v37 = vmul.f32 %v3254_v6, %v3219_v12  ;;  %v3277_v56 = vadd.f32 1.0, %v2524_v9 }
 0x187   : > { %v1526_v58 = vsel %vm1525_vm4, %v3216_v11, %v1522_v49  ;;  %vm1528_vm6 = vcmp.eq.f32.partialorder %v1527_v41, 8.507059e+37  ;;  %v1080_v39 = vmul.f32 %v3130_v1, %v1079_v52  ;;  %vm1538_vm7 = vweird.f32 %v3219_v12 }
 0x188   : > { %2533 = vrcp.f32 %v3266_v47  ;;  %v1210_v59 = vpop.f32.mrf.mxu1  ;;  %v1531_v42 = vsel %vm1528_vm6, %v1530_v50, %v1526_v58  ;;  %vm3292_vm9 = vcmp.eq.f32.partialorder %v1086_v54, 8.507059e+37  ;;  %v1089_v62 = vor.u32 1.1754944e-38, %v1088_v15 }
 0x189   : > { %v1211_v46 = vadd.f32 %v2857_v0, %v1210_v59  ;;  %v1535_v63 = vsub.f32 1.0, %v1534_v37  ;;  %vm1539_vm10 = vweird.f32 %v3254_v6  ;;  %v1081_v4 = vadd.f32 %v3130_v1, %v1080_v39 }
 0x18a   : > { %2301 = vmatmul.msk.f32.gmra.mxu2 %vm1890_vm5, %v1531_v42  ;;  %v1544_v34 = vand.u32 2147483648, %v3219_v12  ;;  %v1093_v51 = vmul.f32 %v3198_v55, %v3149_v17  ;;  %v1542_v8 = vand.u32 2147483647, %v3219_v12  ;;  %vm1097_vm11 = vweird.f32 %v3149_v17  ;;  %vm1540_vm13 = vmor %vm1538_vm7, %vm1539_vm10 }
 0x18b   : > { %v2532_v0 = vpop.eup %2531  ;;  %v2273_v2 = vmul.f32 -1.442695, %v1211_v46  ;;  %v1536_v35 = vmul.f32 %v3254_v6, %v1535_v63  ;;  %v1085_v10 = vsel %vm3288_vm8, %v3130_v1, %v1081_v4  ;;  %vm1098_vm12 = vweird.f32 %v3198_v55 }
 0x18c   : > { %v3302_v7 = vadd.f32 1.0, %v2532_v0  ;;  %v1094_v11 = vsub.f32 1.0, %v1093_v51  ;;  %v1090_v14 = vsel %vm3292_vm9, %v1089_v62, %v1085_v10  ;;  %v1101_v19 = vand.u32 2147483647, %v3149_v17  ;;  %vm3329_vm15 = vmor %vm1097_vm11, %vm1098_vm12 }
 0x18d   : > { %2535 = vpow2.f32 %v2273_v2  ;;  %v1537_v16 = vadd.f32 %v3254_v6, %v1536_v35  ;;  %v1545_v1 = vor.u32 1.1754944e-38, %v1544_v34  ;;  %v1103_v21 = vand.u32 2147483648, %v3149_v17 }
 0x18e   : > { %v2534_v13 = vpop.eup %2533  ;;  %2537 = vrcp.f32 %v3302_v7  ;;  %1257 = vmatmul.f32.gmra.mxu3 %v1090_v14  ;;  %v1095_v20 = vmul.f32 %v3198_v55, %v1094_v11  ;;  %vm1543_vm14 = vcmp.eq.f32.partialorder %v1542_v8, 8.507059e+37  ;;  %vm1553_vm1 = vweird.f32 %v3266_v47 }
 0x18f   : > { %v1549_v57 = vmul.f32 %v2534_v13, %v3266_v47  ;;  %2539 = vrcp.f32 %v3277_v56  ;;  %v1541_v22 = vsel %vm1540_vm13, %v3254_v6, %v1537_v16  ;;  %v1104_v3 = vor.u32 1.1754944e-38, %v1103_v21 }
 0x190   : > { %v1213_v5 = vpop.f32.mrf.mxu1  ;;  %v1546_v9 = vsel %vm1543_vm14, %v1545_v1, %v1541_v22  ;;  %v1096_v28 = vadd.f32 %v3198_v55, %v1095_v20  ;;  %vm3341_vm2 = vcmp.eq.f32.partialorder %v1101_v19, 8.507059e+37  ;;  %vm1554_vm3 = vweird.f32 %v2534_v13 }
 0x191   : > { %v1214_v27 = vadd.f32 %v3337_v25, %v1213_v5  ;;  %v1550_v17 = vsub.f32 1.0, %v1549_v57  ;;  %v1108_v29 = vmul.f32 %v3244_v30, %v3191_v53  ;;  %v1557_v32 = vand.u32 2147483647, %v3266_v47  ;;  %vm1555_vm7 = vmor %vm1553_vm1, %vm1554_vm3 }
 0x192   : > { %2302 = vmatmul.msk.f32.gmra.mxu2 %vm1890_vm5, %v1546_v9  ;;  %v1100_v33 = vsel %vm3329_vm15, %v3198_v55, %v1096_v28  ;;  %v1559_v23 = vand.u32 2147483648, %v3266_v47  ;;  %vm1112_vm4 = vweird.f32 %v3191_v53  ;;  %vm1113_vm6 = vweird.f32 %v3244_v30 }
 0x193   : > { %v2536_v18 = vpop.eup %2535  ;;  %v2274_v31 = vmul.f32 -1.442695, %v1214_v27  ;;  %v1551_v6 = vmul.f32 %v2534_v13, %v1550_v17  ;;  %v1105_v40 = vsel %vm3341_vm2, %v1104_v3, %v1100_v33  ;;  %v1109_v41 = vsub.f32 1.0, %v1108_v29  ;;  %vm3374_vm10 = vmor %vm1112_vm4, %vm1113_vm6 }
 0x194   : > { %v2538_v36 = vpop.eup %2537  ;;  %v3353_v38 = vadd.f32 1.0, %v2536_v18  ;;  %v1118_v43 = vand.u32 2147483648, %v3191_v53  ;;  %v1116_v45 = vand.u32 2147483647, %v3191_v53  ;;  %vm1558_vm8 = vcmp.eq.f32.partialorder %v1557_v32, 8.507059e+37 }
 0x195   : > { %2541 = vpow2.f32 %v2274_v31  ;;  %v3360_v55 = vpop.eup %2539  ;;  %v1552_v44 = vadd.f32 %v2534_v13, %v1551_v6  ;;  %v1564_v24 = vmul.f32 %v2538_v36, %v3302_v7  ;;  %v1560_v48 = vor.u32 1.1754944e-38, %v1559_v23 }
 0x196   : > { %2543 = vrcp.f32 %v3353_v38  ;;  %1260 = vmatmul.f32.gmra.mxu3 %v1105_v40  ;;  %v1110_v49 = vmul.f32 %v3244_v30, %v1109_v41  ;;  %vm1568_vm9 = vweird.f32 %v3302_v7  ;;  %v1119_v15 = vor.u32 1.1754944e-38, %v1118_v43 }
 0x197   : > { %v1556_v50 = vsel %vm1555_vm7, %v2534_v13, %v1552_v44  ;;  %v1565_v37 = vsub.f32 1.0, %v1564_v24  ;;  %v1574_v47 = vand.u32 2147483648, %v3302_v7  ;;  %v1123_v46 = vmul.f32 %v3360_v55, %v3277_v56 }
 0x198   : > { %v1216_v52 = vpop.f32.mrf.mxu1  ;;  %v1561_v58 = vsel %vm1558_vm8, %v1560_v48, %v1556_v50  ;;  %v1111_v42 = vadd.f32 %v3244_v30, %v1110_v49  ;;  %vm3383_vm11 = vcmp.eq.f32.partialorder %v1116_v45, 8.507059e+37  ;;  %vm1569_vm12 = vweird.f32 %v2538_v36 }
 0x199   : > { %v1217_v59 = vadd.f32 %v3337_v25, %v1216_v52  ;;  %v1566_v53 = vmul.f32 %v2538_v36, %v1565_v37  ;;  %v1572_v60 = vand.u32 2147483647, %v3302_v7  ;;  %v1575_v0 = vor.u32 1.1754944e-38, %v1574_v47  ;;  %vm1570_vm15 = vmor %vm1568_vm9, %vm1569_vm12 }
 0x19a   : > { %2303 = vmatmul.msk.f32.gmra.mxu2 %vm1890_vm5, %v1561_v58  ;;  %v1115_v63 = vsel %vm3374_vm10, %v3244_v30, %v1111_v42  ;;  %v1124_v2 = vsub.f32 1.0, %v1123_v46  ;;  %vm1127_vm13 = vweird.f32 %v3277_v56  ;;  %vm1128_vm14 = vweird.f32 %v3360_v55 }
 0x19b   : > { %v2542_v61 = vpop.eup %2541  ;;  %v2275_v62 = vmul.f32 -1.442695, %v1217_v59  ;;  %v1567_v51 = vadd.f32 %v2538_v36, %v1566_v53  ;;  %v1120_v35 = vsel %vm3383_vm11, %v1119_v15, %v1115_v63  ;;  %v1131_v11 = vand.u32 2147483647, %v3277_v56  ;;  %vm3411_vm2 = vmor %vm1127_vm13, %vm1128_vm14 }
 0x19c   : > { %v2544_v4 = vpop.eup %2543  ;;  %v3392_v34 = vadd.f32 1.0, %v2542_v61  ;;  %v1125_v30 = vmul.f32 %v3360_v55, %v1124_v2  ;;  %v1133_v13 = vand.u32 2147483648, %v3277_v56  ;;  %vm1573_vm1 = vcmp.eq.f32.partialorder %v1572_v60, 8.507059e+37 }
 0x19d   : > { %2545 = vpow2.f32 %v2275_v62  ;;  %v1579_v8 = vmul.f32 %v2544_v4, %v3353_v38  ;;  %v1571_v10 = vsel %vm1570_vm15, %v2538_v36, %v1567_v51  ;;  %vm1584_vm3 = vweird.f32 %v2544_v4 }
 0x19e   : > { %2547 = vrcp.f32 %v3392_v34  ;;  %1263 = vmatmul.f32.gmra.mxu3 %v1120_v35  ;;  %v1126_v14 = vadd.f32 %v3360_v55, %v1125_v30  ;;  %v1576_v19 = vsel %vm1573_vm1, %v1575_v0, %v1571_v10  ;;  %vm3416_vm4 = vcmp.eq.f32.partialorder %v1131_v11, 8.507059e+37 }
 0x19f   : > { %v1580_v16 = vsub.f32 1.0, %v1579_v8  ;;  %v1134_v22 = vor.u32 1.1754944e-38, %v1133_v13  ;;  %vm1583_vm6 = vweird.f32 %v3353_v38  ;;  %v1589_v5 = vand.u32 2147483648, %v3353_v38 }
 0x1a0   : > { %v1219_v1 = vpop.f32.mrf.mxu1  ;;  %v1130_v9 = vsel %vm3411_vm2, %v3360_v55, %v1126_v14  ;;  %v1587_v28 = vand.u32 2147483647, %v3353_v38  ;;  %vm1585_vm7 = vmor %vm1583_vm6, %vm1584_vm3  ;;  %v1604_v6 = vand.u32 2147483648, %v3392_v34  ;;  %vm1598_vm10 = vweird.f32 %v3392_v34 }
 0x1a1   : > { %v1220_v20 = vadd.f32 %v3337_v25, %v1219_v1  ;;  %v1581_v21 = vmul.f32 %v2544_v4, %v1580_v16  ;;  %v1135_v18 = vsel %vm3416_vm4, %v1134_v22, %v1130_v9  ;;  %v1590_v31 = vor.u32 1.1754944e-38, %v1589_v5 }
 0x1a2   : > { %2304 = vmatmul.msk.f32.gmra.mxu2 %vm1890_vm5, %v1576_v19  ;;  %vm1588_vm8 = vcmp.eq.f32.partialorder %v1587_v28, 8.507059e+37  ;;  %v1602_v55 = vand.u32 2147483647, %v3392_v34  ;;  %v1605_v49 = vor.u32 1.1754944e-38, %v1604_v6 }
 0x1a3   : > { %v2546_v12 = vpop.eup %2545  ;;  %v2276_v56 = vmul.f32 -1.442695, %v1220_v20  ;;  %v1582_v27 = vadd.f32 %v2544_v4, %v1581_v21 }
 0x1a4   : > { %v2548_v3 = vpop.eup %2547  ;;  %v1380_v26 = vadd.f32 1.0, %v2546_v12  ;;  %vm1603_vm12 = vcmp.eq.f32.partialorder %v1602_v55, 8.507059e+37 }
 0x1a5   : > { %2549 = vpow2.f32 %v2276_v56  ;;  %v1586_v17 = vsel %vm1585_vm7, %v2544_v4, %v1582_v27  ;;  %v1594_v29 = vmul.f32 %v2548_v3, %v3392_v34  ;;  %vm1599_vm9 = vweird.f32 %v2548_v3 }
 0x1a6   : > { %2551 = vrcp.f32 %v1380_v26  ;;  %1266 = vmatmul.f32.gmra.mxu3 %v1135_v18  ;;  %v1591_v32 = vsel %vm1588_vm8, %v1590_v31, %v1586_v17  ;;  %vm1600_vm11 = vmor %vm1598_vm10, %vm1599_vm9  ;;  %v1619_v47 = vand.u32 2147483648, %v1380_v26  ;;  %vm1613_vm14 = vweird.f32 %v1380_v26 }
 0x1a7   : > { %v1595_v33 = vsub.f32 1.0, %v1594_v29  ;;  %v1617_v46 = vand.u32 2147483647, %v1380_v26  ;;  %v3444_v29 = vld [vmem:[%s3586_s6] ss:$0 sm:$0xff] }
 0x1a8   : > { %v1222_v23 = vpop.f32.mrf.mxu1  ;;  %v1620_v62 = vor.u32 1.1754944e-38, %v1619_v47 }
 0x1a9   : > { %v1223_v36 = vadd.f32 %v3337_v25, %v1222_v23  ;;  %v1596_v38 = vmul.f32 %v2548_v3, %v1595_v33  ;;  %vm1618_vm1 = vcmp.eq.f32.partialorder %v1617_v46, 8.507059e+37 }
 0x1aa   : > { %2305 = vmatmul.msk.f32.gmra.mxu2 %vm1890_vm5, %v1591_v32 }
 0x1ab   : > { %v2550_v40 = vpop.eup %2549  ;;  %v2277_v41 = vmul.f32 -1.442695, %v1223_v36  ;;  %v1597_v43 = vadd.f32 %v2548_v3, %v1596_v38 }
 0x1ac   : > { %v2552_v44 = vpop.eup %2551  ;;  %v1381_v45 = vadd.f32 1.0, %v2550_v40 }
 0x1ad   : > { %2553 = vpow2.f32 %v2277_v41  ;;  %v1601_v24 = vsel %vm1600_vm11, %v2548_v3, %v1597_v43  ;;  %v1609_v48 = vmul.f32 %v2552_v44, %v1380_v26  ;;  %vm1614_vm13 = vweird.f32 %v2552_v44 }
 0x1ae   : > { %2555 = vrcp.f32 %v1381_v45  ;;  %v1606_v52 = vsel %vm1603_vm12, %v1605_v49, %v1601_v24  ;;  %vm1615_vm15 = vmor %vm1613_vm14, %vm1614_vm13  ;;  %v1634_v51 = vand.u32 2147483648, %v1381_v45  ;;  %vm1628_vm3 = vweird.f32 %v1381_v45 }
 0x1af   : > { %v1610_v50 = vsub.f32 1.0, %v1609_v48  ;;  %v1632_v10 = vand.u32 2147483647, %v1381_v45 }
 0x1b0   : > { %v1225_v54 = vpop.f32.mrf.mxu1  ;;  %v1635_v19 = vor.u32 1.1754944e-38, %v1634_v51 }
 0x1b1   : > { %v1226_v15 = vadd.f32 %v3337_v25, %v1225_v54  ;;  %v1611_v37 = vmul.f32 %v2552_v44, %v1610_v50  ;;  %vm1633_vm6 = vcmp.eq.f32.partialorder %v1632_v10, 8.507059e+37 }
 0x1b2   : > { %2306 = vmatmul.msk.f32.gmra.mxu2 %vm1890_vm5, %v1606_v52 }
 0x1b3   : > { %v2554_v58 = vpop.eup %2553  ;;  %v2278_v59 = vmul.f32 -1.442695, %v1226_v15  ;;  %v1612_v42 = vadd.f32 %v2552_v44, %v1611_v37 }
 0x1b4   : > { %v2556_v39 = vpop.eup %2555  ;;  %v1382_v53 = vadd.f32 1.0, %v2554_v58 }
 0x1b5   : > { %2557 = vpow2.f32 %v2278_v59  ;;  %v1616_v60 = vsel %vm1615_vm15, %v2552_v44, %v1612_v42  ;;  %v1624_v61 = vmul.f32 %v2556_v39, %v1381_v45  ;;  %vm1629_vm2 = vweird.f32 %v2556_v39 }
 0x1b6   : > { %2559 = vrcp.f32 %v1382_v53  ;;  %v1621_v0 = vsel %vm1618_vm1, %v1620_v62, %v1616_v60  ;;  %vm1630_vm4 = vmor %vm1628_vm3, %vm1629_vm2  ;;  %v1649_v22 = vand.u32 2147483648, %v1382_v53  ;;  %vm1643_vm8 = vweird.f32 %v1382_v53 }
 0x1b7   : > { %v1625_v63 = vsub.f32 1.0, %v1624_v61  ;;  %v1647_v9 = vand.u32 2147483647, %v1382_v53 }
 0x1b8   : > { %v1228_v2 = vpop.f32.mrf.mxu1  ;;  %v1650_v17 = vor.u32 1.1754944e-38, %v1649_v22 }
 0x1b9   : > { %v1229_v4 = vadd.f32 %v3337_v25, %v1228_v2  ;;  %v1626_v34 = vmul.f32 %v2556_v39, %v1625_v63  ;;  %vm1648_vm10 = vcmp.eq.f32.partialorder %v1647_v9, 8.507059e+37 }
 0x1ba   : > { %2307 = vmatmul.msk.f32.gmra.mxu2 %vm1890_vm5, %v1621_v0 }
 0x1bb   : > { %v2558_v35 = vpop.eup %2557  ;;  %v2279_v30 = vmul.f32 -1.442695, %v1229_v4  ;;  %v1627_v8 = vadd.f32 %v2556_v39, %v1626_v34 }
 0x1bc   : > { %v2560_v11 = vpop.eup %2559  ;;  %v1383_v13 = vadd.f32 1.0, %v2558_v35 }
 0x1bd   : > { %2561 = vpow2.f32 %v2279_v30  ;;  %v1631_v14 = vsel %vm1630_vm4, %v2556_v39, %v1627_v8  ;;  %v1639_v16 = vmul.f32 %v2560_v11, %v1382_v53  ;;  %vm1644_vm7 = vweird.f32 %v2560_v11 }
 0x1be   : > { %2563 = vrcp.f32 %v1383_v13  ;;  %v1636_v7 = vsel %vm1633_vm6, %v1635_v19, %v1631_v14  ;;  %vm1645_vm9 = vmor %vm1643_vm8, %vm1644_vm7  ;;  %v1664_v38 = vand.u32 2147483648, %v1383_v13  ;;  %vm1658_vm12 = vweird.f32 %v1383_v13 }
 0x1bf   : > { %v1640_v1 = vsub.f32 1.0, %v1639_v16  ;;  %v1662_v43 = vand.u32 2147483647, %v1383_v13 }
 0x1c0   : > { %v1231_v20 = vpop.f32.mrf.mxu1  ;;  %v1665_v49 = vor.u32 1.1754944e-38, %v1664_v38 }
 0x1c1   : > { %v1232_v21 = vadd.f32 %v3337_v25, %v1231_v20  ;;  %v1641_v57 = vmul.f32 %v2560_v11, %v1640_v1  ;;  %vm1663_vm14 = vcmp.eq.f32.partialorder %v1662_v43, 8.507059e+37 }
 0x1c2   : > { %2308 = vmatmul.msk.f32.gmra.mxu2 %vm1890_vm5, %v1636_v7 }
 0x1c3   : > { %v2562_v5 = vpop.eup %2561  ;;  %v2280_v12 = vmul.f32 -1.442695, %v1232_v21  ;;  %v1642_v56 = vadd.f32 %v2560_v11, %v1641_v57 }
 0x1c4   : > { %v2564_v27 = vpop.eup %2563  ;;  %v1384_v28 = vadd.f32 1.0, %v2562_v5 }
 0x1c5   : > { %2565 = vpow2.f32 %v2280_v12  ;;  %v1646_v3 = vsel %vm1645_vm9, %v2560_v11, %v1642_v56  ;;  %v1654_v26 = vmul.f32 %v2564_v27, %v1383_v13  ;;  %vm1659_vm11 = vweird.f32 %v2564_v27 }
 0x1c6   : > { %2567 = vrcp.f32 %v1384_v28  ;;  %v1651_v31 = vsel %vm1648_vm10, %v1650_v17, %v1646_v3  ;;  %vm1660_vm13 = vmor %vm1658_vm12, %vm1659_vm11  ;;  %v1679_v58 = vand.u32 2147483648, %v1384_v28  ;;  %vm1673_vm1 = vweird.f32 %v1384_v28 }
 0x1c7   : > { %v1655_v18 = vsub.f32 1.0, %v1654_v26  ;;  %v1677_v46 = vand.u32 2147483647, %v1384_v28 }
 0x1c8   : > { %v1680_v0 = vor.u32 1.1754944e-38, %v1679_v58 }
 0x1c9   : > { %v1234_v33 = vpop.f32.mrf.mxu1  ;;  %v1656_v32 = vmul.f32 %v2564_v27, %v1655_v18  ;;  %vm1678_vm3 = vcmp.eq.f32.partialorder %v1677_v46, 8.507059e+37 }
 0x1ca   : > { %v1235_v23 = vadd.f32 %v3337_v25, %v1234_v33  ;;  %v2004_v36 = vpop.f32.mrf.mxu2  ;;  %2309 = vmatmul.msk.f32.gmra.mxu2 %vm1890_vm5, %v1651_v31 }
 0x1cb   : > { %v2566_v6 = vpop.eup %2565  ;;  %v2005_v40 = vadd.f32 %v3444_v29, %v2004_v36  ;;  %v1657_v41 = vadd.f32 %v2564_v27, %v1656_v32 }
 0x1cc   : > { %v2568_v55 = vpop.eup %2567  ;;  %v1385_v44 = vadd.f32 1.0, %v2566_v6  ;;  %v2281_v45 = vmul.f32 -1.442695, %v1235_v23 }
 0x1cd   : > { %2100 = vst.msk [vmem:[%s3452_s11] sm:$0xff] %vm319_vm0, %v2005_v40  ;;  %v1661_v24 = vsel %vm1660_vm13, %v2564_v27, %v1657_v41  ;;  %v1669_v48 = vmul.f32 %v2568_v55, %v1384_v28  ;;  %vm1674_vm15 = vweird.f32 %v2568_v55 }
 0x1ce   : > { %2569 = vrcp.f32 %v1385_v44  ;;  %v1666_v52 = vsel %vm1663_vm14, %v1665_v49, %v1661_v24  ;;  %vm1675_vm2 = vmor %vm1673_vm1, %vm1674_vm15  ;;  %v1694_v35 = vand.u32 2147483648, %v1385_v44  ;;  %vm1688_vm6 = vweird.f32 %v1385_v44 }
 0x1cf   : > { %2571 = vpow2.f32 %v2281_v45  ;;  %v1670_v50 = vsub.f32 1.0, %v1669_v48  ;;  %v1692_v11 = vand.u32 2147483647, %v1385_v44 }
 0x1d0   : > { %v1695_v20 = vor.u32 1.1754944e-38, %v1694_v35 }
 0x1d1   : > { %v1237_v54 = vpop.f32.mrf.mxu1  ;;  %v1671_v15 = vmul.f32 %v2568_v55, %v1670_v50  ;;  %vm1693_vm8 = vcmp.eq.f32.partialorder %v1692_v11, 8.507059e+37 }
 0x1d2   : > { %v1238_v37 = vadd.f32 %v3337_v25, %v1237_v54  ;;  %v2007_v47 = vpop.f32.mrf.mxu2  ;;  %2310 = vmatmul.msk.f32.gmra.mxu2 %vm1890_vm5, %v1666_v52 }
 0x1d3   : > { %v2008_v59 = vadd.f32 %v3444_v29, %v2007_v47  ;;  %v1672_v42 = vadd.f32 %v2568_v55, %v1671_v15 }
 0x1d4   : > { %v2570_v39 = vpop.eup %2569  ;;  %v2282_v53 = vmul.f32 -1.442695, %v1238_v37 }
 0x1d5   : > { %v2572_v60 = vpop.eup %2571  ;;  %2101 = vst.msk [vmem:[%s3452_s11 + $0x8] sm:$0xff] %vm319_vm0, %v2008_v59  ;;  %v1676_v61 = vsel %vm1675_vm2, %v2568_v55, %v1672_v42  ;;  %v1684_v62 = vmul.f32 %v2570_v39, %v1385_v44  ;;  %vm1689_vm4 = vweird.f32 %v2570_v39 }
 0x1d6   : > { %v1386_v63 = vadd.f32 1.0, %v2572_v60  ;;  %2573 = vpow2.f32 %v2282_v53  ;;  %v1681_v4 = vsel %vm1678_vm3, %v1680_v0, %v1676_v61  ;;  %vm1690_vm7 = vmor %vm1688_vm6, %vm1689_vm4 }
 0x1d7   : > { %v1685_v2 = vsub.f32 1.0, %v1684_v62 }
 0x1d8   : > { %2575 = vrcp.f32 %v1386_v63  ;;  %v1709_v5 = vand.u32 2147483648, %v1386_v63  ;;  %v1707_v9 = vand.u32 2147483647, %v1386_v63  ;;  %vm1703_vm10 = vweird.f32 %v1386_v63 }
 0x1d9   : > { %v1686_v34 = vmul.f32 %v2570_v39, %v1685_v2  ;;  %v1240_v51 = vpop.f32.mrf.mxu1 }
 0x1da   : > { %2311 = vmatmul.msk.f32.gmra.mxu2 %vm1890_vm5, %v1681_v4  ;;  %v1241_v30 = vadd.f32 %v3337_v25, %v1240_v51  ;;  %v1710_v17 = vor.u32 1.1754944e-38, %v1709_v5  ;;  %vm1708_vm12 = vcmp.eq.f32.partialorder %v1707_v9, 8.507059e+37 }
 0x1db   : > { %v2010_v8 = vpop.f32.mrf.mxu2  ;;  %v1687_v10 = vadd.f32 %v2570_v39, %v1686_v34 }
 0x1dc   : > { %v2574_v13 = vpop.eup %2573  ;;  %v2011_v14 = vadd.f32 %v3444_v29, %v2010_v8  ;;  %v2283_v19 = vmul.f32 -1.442695, %v1241_v30 }
 0x1dd   : > { %v1387_v16 = vadd.f32 1.0, %v2574_v13  ;;  %v1691_v1 = vsel %vm1690_vm7, %v2570_v39, %v1687_v10 }
 0x1de   : > { %v2576_v7 = vpop.eup %2575  ;;  %2102 = vst.msk [vmem:[%s3452_s11 + $0x10] sm:$0xff] %vm319_vm0, %v2011_v14  ;;  %v1696_v57 = vsel %vm1693_vm8, %v1695_v20, %v1691_v1 }
 0x1df   : > { %2577 = vrcp.f32 %v1387_v16  ;;  %v1699_v21 = vmul.f32 %v2576_v7, %v1386_v63  ;;  %vm1704_vm9 = vweird.f32 %v2576_v7  ;;  %v1724_v40 = vand.u32 2147483648, %v1387_v16 }
 0x1e0   : > { %2579 = vpow2.f32 %v2283_v19  ;;  %vm1705_vm11 = vmor %vm1703_vm10, %vm1704_vm9  ;;  %v1722_v43 = vand.u32 2147483647, %v1387_v16  ;;  %vm1718_vm14 = vweird.f32 %v1387_v16 }
 0x1e1   : > { %v1700_v22 = vsub.f32 1.0, %v1699_v21  ;;  %v1725_v48 = vor.u32 1.1754944e-38, %v1724_v40 }
 0x1e2   : > { %2312 = vmatmul.msk.f32.gmra.mxu2 %vm1890_vm5, %v1696_v57  ;;  %vm1723_vm1 = vcmp.eq.f32.partialorder %v1722_v43, 8.507059e+37 }
 0x1e3   : > { %v2013_v12 = vpop.f32.mrf.mxu2  ;;  %v1701_v56 = vmul.f32 %v2576_v7, %v1700_v22 }
 0x1e4   : > { %v2014_v27 = vadd.f32 %v3444_v29, %v2013_v12 }
 0x1e5   : > { %v2578_v28 = vpop.eup %2577  ;;  %v1702_v3 = vadd.f32 %v2576_v7, %v1701_v56 }
 0x1e6   : > { %v2580_v26 = vpop.eup %2579  ;;  %2103 = vst.msk [vmem:[%s3452_s11 + $0x18] sm:$0xff] %vm319_vm0, %v2014_v27  ;;  %v1714_v18 = vmul.f32 %v2578_v28, %v1387_v16  ;;  %vm1719_vm13 = vweird.f32 %v2578_v28 }
 0x1e7   : > { %v1388_v31 = vadd.f32 1.0, %v2580_v26  ;;  %v1706_v33 = vsel %vm1705_vm11, %v2576_v7, %v1702_v3  ;;  %v1243_v32 = vpop.f32.mrf.mxu3  ;;  %vm1720_vm15 = vmor %vm1718_vm14, %vm1719_vm13 }
 0x1e8   : > { %v1711_v23 = vsel %vm1708_vm12, %v1710_v17, %v1706_v33  ;;  %v1715_v36 = vsub.f32 1.0, %v1714_v18  ;;  %v1244_v38 = vadd.f32 %v3337_v25, %v1243_v32 }
 0x1e9   : > { %2581 = vrcp.f32 %v1388_v31  ;;  %v1739_v58 = vand.u32 2147483648, %v1388_v31  ;;  %v1737_v46 = vand.u32 2147483647, %v1388_v31  ;;  %vm1733_vm3 = vweird.f32 %v1388_v31 }
 0x1ea   : > { %v1716_v6 = vmul.f32 %v2578_v28, %v1715_v36  ;;  %v2284_v41 = vmul.f32 -1.442695, %v1244_v38  ;;  %2313 = vmatmul.msk.f32.gmra.mxu2 %vm1890_vm5, %v1711_v23 }
 0x1eb   : > { %v1740_v62 = vor.u32 1.1754944e-38, %v1739_v58  ;;  %vm1738_vm6 = vcmp.eq.f32.partialorder %v1737_v46, 8.507059e+37 }
 0x1ec   : > { %v1717_v55 = vadd.f32 %v2578_v28, %v1716_v6  ;;  %2583 = vpow2.f32 %v2284_v41  ;;  %v2016_v44 = vpop.f32.mrf.mxu2 }
 0x1ed   : > { %v2017_v45 = vadd.f32 %v3444_v29, %v2016_v44 }
 0x1ee   : > { %v1721_v24 = vsel %vm1720_vm15, %v2578_v28, %v1717_v55 }
 0x1ef   : > { %v2582_v49 = vpop.eup %2581  ;;  %2104 = vst.msk [vmem:[%s3452_s11 + $0x20] sm:$0xff] %vm319_vm0, %v2017_v45  ;;  %v1726_v50 = vsel %vm1723_vm1, %v1725_v48, %v1721_v24 }
 0x1f0   : > { %v1729_v52 = vmul.f32 %v2582_v49, %v1388_v31  ;;  %vm1734_vm2 = vweird.f32 %v2582_v49 }
 0x1f1   : > { %v1246_v54 = vpop.f32.mrf.mxu3  ;;  %vm1735_vm4 = vmor %vm1733_vm3, %vm1734_vm2 }
 0x1f2   : > { %v1730_v15 = vsub.f32 1.0, %v1729_v52  ;;  %v2584_v37 = vpop.eup %2583  ;;  %v1247_v47 = vadd.f32 %v3337_v25, %v1246_v54  ;;  %2314 = vmatmul.msk.f32.gmra.mxu2 %vm1890_vm5, %v1726_v50 }
 0x1f3   : > { %v1389_v59 = vadd.f32 1.0, %v2584_v37 }
 0x1f4   : > { %v1731_v42 = vmul.f32 %v2582_v49, %v1730_v15  ;;  %v2285_v39 = vmul.f32 -1.442695, %v1247_v47  ;;  %v2019_v53 = vpop.f32.mrf.mxu2 }
 0x1f5   : > { %2585 = vrcp.f32 %v1389_v59  ;;  %v2020_v60 = vadd.f32 %v3444_v29, %v2019_v53  ;;  %v1754_v14 = vand.u32 2147483648, %v1389_v59  ;;  %v1752_v19 = vand.u32 2147483647, %v1389_v59 }
 0x1f6   : > { %v1732_v61 = vadd.f32 %v2582_v49, %v1731_v42  ;;  %2587 = vpow2.f32 %v2285_v39  ;;  %vm1748_vm8 = vweird.f32 %v1389_v59 }
 0x1f7   : > { %2105 = vst.msk [vmem:[%s3452_s11 + $0x28] sm:$0xff] %vm319_vm0, %v2020_v60  ;;  %v1755_v21 = vor.u32 1.1754944e-38, %v1754_v14  ;;  %vm1753_vm10 = vcmp.eq.f32.partialorder %v1752_v19, 8.507059e+37 }
 0x1f8   : > { %v1736_v63 = vsel %vm1735_vm4, %v2582_v49, %v1732_v61 }
 0x1f9   : > { %v1741_v0 = vsel %vm1738_vm6, %v1740_v62, %v1736_v63  ;;  %v1249_v2 = vpop.f32.mrf.mxu3 }
 0x1fa   : > { %v1250_v4 = vadd.f32 %v3337_v25, %v1249_v2  ;;  %2315 = vmatmul.msk.f32.gmra.mxu2 %vm1890_vm5, %v1741_v0 }
 0x1fb   : > { %v2586_v34 = vpop.eup %2585 }
 0x1fc   : > { %v2588_v51 = vpop.eup %2587  ;;  %v2286_v35 = vmul.f32 -1.442695, %v1250_v4  ;;  %v1744_v30 = vmul.f32 %v2586_v34, %v1389_v59  ;;  %vm1749_vm7 = vweird.f32 %v2586_v34 }
 0x1fd   : > { %v1390_v8 = vadd.f32 1.0, %v2588_v51  ;;  %v2022_v10 = vpop.f32.mrf.mxu2  ;;  %vm1750_vm9 = vmor %vm1748_vm8, %vm1749_vm7 }
 0x1fe   : > { %2589 = vpow2.f32 %v2286_v35  ;;  %v2023_v11 = vadd.f32 %v3444_v29, %v2022_v10  ;;  %v1745_v13 = vsub.f32 1.0, %v1744_v30 }
 0x1ff   : > { %2591 = vrcp.f32 %v1390_v8  ;;  %v1767_v18 = vand.u32 2147483647, %v1390_v8  ;;  %v1769_v31 = vand.u32 2147483648, %v1390_v8  ;;  %vm1763_vm12 = vweird.f32 %v1390_v8 }
 0x200   : > { %2106 = vst.msk [vmem:[%s3452_s11 + $0x30] sm:$0xff] %vm319_vm0, %v2023_v11  ;;  %v1746_v16 = vmul.f32 %v2586_v34, %v1745_v13 }
 0x201   : > { %v1252_v1 = vpop.f32.mrf.mxu3  ;;  %vm1768_vm14 = vcmp.eq.f32.partialorder %v1767_v18, 8.507059e+37  ;;  %v1770_v43 = vor.u32 1.1754944e-38, %v1769_v31 }
 0x202   : > { %v1253_v7 = vadd.f32 %v3337_v25, %v1252_v1  ;;  %v1747_v20 = vadd.f32 %v2586_v34, %v1746_v16 }
 0x204   : > { %v2590_v57 = vpop.eup %2589  ;;  %v2287_v22 = vmul.f32 -1.442695, %v1253_v7  ;;  %v1751_v5 = vsel %vm1750_vm9, %v2586_v34, %v1747_v20 }
 0x205   : > { %v2592_v12 = vpop.eup %2591  ;;  %v1391_v56 = vadd.f32 1.0, %v2590_v57  ;;  %v2025_v9 = vpop.f32.mrf.mxu2  ;;  %v1756_v27 = vsel %vm1753_vm10, %v1755_v21, %v1751_v5 }
 0x206   : > { %2593 = vpow2.f32 %v2287_v22  ;;  %v2026_v28 = vadd.f32 %v3444_v29, %v2025_v9  ;;  %2316 = vmatmul.msk.f32.gmra.mxu2 %vm1890_vm5, %v1756_v27  ;;  %v1759_v3 = vmul.f32 %v2592_v12, %v1390_v8  ;;  %vm1764_vm11 = vweird.f32 %v2592_v12 }
 0x207   : > { %2595 = vrcp.f32 %v1391_v56  ;;  %vm1765_vm13 = vmor %vm1763_vm12, %vm1764_vm11  ;;  %v1782_v50 = vand.u32 2147483647, %v1391_v56  ;;  %v1784_v52 = vand.u32 2147483648, %v1391_v56  ;;  %vm1778_vm1 = vweird.f32 %v1391_v56 }
 0x208   : > { %2107 = vst.msk [vmem:[%s3452_s11 + $0x38] sm:$0xff] %vm319_vm0, %v2026_v28  ;;  %v1760_v26 = vsub.f32 1.0, %v1759_v3 }
 0x209   : > { %v1255_v17 = vpop.f32.mrf.mxu3  ;;  %vm1783_vm3 = vcmp.eq.f32.partialorder %v1782_v50, 8.507059e+37  ;;  %v1785_v39 = vor.u32 1.1754944e-38, %v1784_v52 }
 0x20a   : > { %v1256_v33 = vadd.f32 %v3337_v25, %v1255_v17  ;;  %v1761_v32 = vmul.f32 %v2592_v12, %v1760_v26 }
 0x20c   : > { %v2594_v23 = vpop.eup %2593  ;;  %v2288_v36 = vmul.f32 -1.442695, %v1256_v33  ;;  %v1762_v38 = vadd.f32 %v2592_v12, %v1761_v32 }
 0x20d   : > { %v2596_v6 = vpop.eup %2595  ;;  %v1392_v40 = vadd.f32 1.0, %v2594_v23  ;;  %v2028_v41 = vpop.f32.mrf.mxu2 }
 0x20e   : > { %v1774_v55 = vmul.f32 %v2596_v6, %v1391_v56  ;;  %2597 = vpow2.f32 %v2288_v36  ;;  %v2029_v44 = vadd.f32 %v3444_v29, %v2028_v41  ;;  %v1766_v45 = vsel %vm1765_vm13, %v2592_v12, %v1762_v38 }
 0x20f   : > { %2599 = vrcp.f32 %v1392_v40  ;;  %v1771_v24 = vsel %vm1768_vm14, %v1770_v43, %v1766_v45  ;;  %vm1779_vm15 = vweird.f32 %v2596_v6  ;;  %v1797_v2 = vand.u32 2147483647, %v1392_v40 }
 0x210   : > { %v1775_v48 = vsub.f32 1.0, %v1774_v55  ;;  %2108 = vst.msk [vmem:[%s3452_s11 + $0x40] sm:$0xff] %vm319_vm0, %v2029_v44  ;;  %2317 = vmatmul.msk.f32.gmra.mxu2 %vm1890_vm5, %v1771_v24  ;;  %vm1780_vm2 = vmor %vm1778_vm1, %vm1779_vm15  ;;  %v1799_v4 = vand.u32 2147483648, %v1392_v40  ;;  %vm1793_vm6 = vweird.f32 %v1392_v40 }
 0x211   : > { %v1258_v49 = vpop.f32.mrf.mxu3  ;;  %vm1798_vm8 = vcmp.eq.f32.partialorder %v1797_v2, 8.507059e+37 }
 0x212   : > { %v1259_v54 = vadd.f32 %v3337_v25, %v1258_v49  ;;  %v1776_v15 = vmul.f32 %v2596_v6, %v1775_v48  ;;  %v1800_v14 = vor.u32 1.1754944e-38, %v1799_v4 }
 0x214   : > { %v2598_v37 = vpop.eup %2597  ;;  %v2289_v47 = vmul.f32 -1.442695, %v1259_v54  ;;  %v1777_v58 = vadd.f32 %v2596_v6, %v1776_v15 }
 0x215   : > { %v2600_v59 = vpop.eup %2599  ;;  %v1393_v42 = vadd.f32 1.0, %v2598_v37  ;;  %v2031_v46 = vpop.f32.mrf.mxu2 }
 0x216   : > { %2601 = vpow2.f32 %v2289_v47  ;;  %v2032_v53 = vadd.f32 %v3444_v29, %v2031_v46  ;;  %v1781_v60 = vsel %vm1780_vm2, %v2596_v6, %v1777_v58  ;;  %v1789_v61 = vmul.f32 %v2600_v59, %v1392_v40 }
 0x217   : > { %2603 = vrcp.f32 %v1393_v42  ;;  %v1786_v62 = vsel %vm1783_vm3, %v1785_v39, %v1781_v60  ;;  %vm1794_vm4 = vweird.f32 %v2600_v59  ;;  %v1812_v57 = vand.u32 2147483647, %v1393_v42 }
 0x218   : > { %2109 = vst.msk [vmem:[%s3452_s11 + $0x48] sm:$0xff] %vm319_vm0, %v2032_v53  ;;  %2318 = vmatmul.msk.f32.vlgmr.msra.gmra.mxu3 %vm1890_vm5, %v1786_v62  ;;  %v1790_v63 = vsub.f32 1.0, %v1789_v61  ;;  %vm1795_vm7 = vmor %vm1793_vm6, %vm1794_vm4  ;;  %v1814_v22 = vand.u32 2147483648, %v1393_v42  ;;  %vm1808_vm10 = vweird.f32 %v1393_v42 }
 0x219   : > { %v1261_v0 = vpop.f32.mrf.mxu3  ;;  %vm1813_vm12 = vcmp.eq.f32.partialorder %v1812_v57, 8.507059e+37 }
 0x21a   : > { %v1262_v34 = vadd.f32 %v3337_v25, %v1261_v0  ;;  %v1791_v51 = vmul.f32 %v2600_v59, %v1790_v63  ;;  %v1815_v17 = vor.u32 1.1754944e-38, %v1814_v22 }
 0x21c   : > { %v2602_v35 = vpop.eup %2601  ;;  %v2290_v30 = vmul.f32 -1.442695, %v1262_v34  ;;  %v1792_v8 = vadd.f32 %v2600_v59, %v1791_v51 }
 0x21d   : > { %v2604_v10 = vpop.eup %2603  ;;  %v1394_v11 = vadd.f32 1.0, %v2602_v35  ;;  %v2034_v13 = vpop.f32.mrf.mxu2 }
 0x21e   : > { %2605 = vpow2.f32 %v2290_v30  ;;  %v2035_v16 = vadd.f32 %v3444_v29, %v2034_v13  ;;  %v1796_v19 = vsel %vm1795_vm7, %v2600_v59, %v1792_v8  ;;  %v1804_v1 = vmul.f32 %v2604_v10, %v1393_v42 }
 0x21f   : > { %2607 = vrcp.f32 %v1394_v11  ;;  %v1801_v7 = vsel %vm1798_vm8, %v1800_v14, %v1796_v19  ;;  %vm1809_vm9 = vweird.f32 %v2604_v10  ;;  %v1827_v38 = vand.u32 2147483647, %v1394_v11 }
 0x220   : > { %2110 = vst.msk [vmem:[%s3452_s11 + $0x50] sm:$0xff] %vm319_vm0, %v2035_v16  ;;  %2319 = vmatmul.msk.f32.gmra.mxu3 %vm1890_vm5, %v1801_v7  ;;  %v1805_v20 = vsub.f32 1.0, %v1804_v1  ;;  %vm1810_vm11 = vmor %vm1808_vm10, %vm1809_vm9  ;;  %v1829_v6 = vand.u32 2147483648, %v1394_v11  ;;  %vm1823_vm14 = vweird.f32 %v1394_v11 }
 0x221   : > { %v1264_v21 = vpop.f32.mrf.mxu3  ;;  %vm1828_vm1 = vcmp.eq.f32.partialorder %v1827_v38, 8.507059e+37 }
 0x222   : > { %v1265_v5 = vadd.f32 %v3337_v25, %v1264_v21  ;;  %v1806_v12 = vmul.f32 %v2604_v10, %v1805_v20  ;;  %v1830_v49 = vor.u32 1.1754944e-38, %v1829_v6 }
 0x224   : > { %v2606_v56 = vpop.eup %2605  ;;  %v2291_v9 = vmul.f32 -1.442695, %v1265_v5  ;;  %v1807_v27 = vadd.f32 %v2604_v10, %v1806_v12 }
 0x225   : > { %v2608_v28 = vpop.eup %2607  ;;  %v1395_v3 = vadd.f32 1.0, %v2606_v56  ;;  %v2037_v26 = vpop.f32.mrf.mxu2 }
 0x226   : > { %2609 = vpow2.f32 %v2291_v9  ;;  %v2038_v18 = vadd.f32 %v3444_v29, %v2037_v26  ;;  %v1811_v31 = vsel %vm1810_vm11, %v2604_v10, %v1807_v27  ;;  %v1819_v33 = vmul.f32 %v2608_v28, %v1394_v11 }
 0x227   : > { %2611 = vrcp.f32 %v1395_v3  ;;  %v1816_v32 = vsel %vm1813_vm12, %v1815_v17, %v1811_v31  ;;  %vm1824_vm13 = vweird.f32 %v2608_v28  ;;  %v1844_v37 = vand.u32 2147483648, %v1395_v3 }
 0x228   : > { %2111 = vst.msk [vmem:[%s3452_s11 + $0x58] sm:$0xff] %vm319_vm0, %v2038_v18  ;;  %2320 = vmatmul.msk.f32.gmra.mxu3 %vm1890_vm5, %v1816_v32  ;;  %v1820_v23 = vsub.f32 1.0, %v1819_v33  ;;  %vm1825_vm15 = vmor %vm1823_vm14, %vm1824_vm13  ;;  %v1842_v58 = vand.u32 2147483647, %v1395_v3  ;;  %vm1838_vm3 = vweird.f32 %v1395_v3 }
 0x229   : > { %v1267_v36 = vpop.f32.mrf.mxu3  ;;  %v1845_v60 = vor.u32 1.1754944e-38, %v1844_v37 }
 0x22a   : > { %v1268_v40 = vadd.f32 %v3337_v25, %v1267_v36  ;;  %v1821_v41 = vmul.f32 %v2608_v28, %v1820_v23  ;;  %vm1843_vm6 = vcmp.eq.f32.partialorder %v1842_v58, 8.507059e+37 }
 0x22c   : > { %v2610_v43 = vpop.eup %2609  ;;  %v2292_v55 = vmul.f32 -1.442695, %v1268_v40  ;;  %v1822_v44 = vadd.f32 %v2608_v28, %v1821_v41 }
 0x22d   : > { %v2612_v45 = vpop.eup %2611  ;;  %v1396_v24 = vadd.f32 1.0, %v2610_v43  ;;  %v2040_v48 = vpop.f32.mrf.mxu2 }
 0x22e   : > { %2613 = vpow2.f32 %v2292_v55  ;;  %v2041_v50 = vadd.f32 %v3444_v29, %v2040_v48  ;;  %v1826_v52 = vsel %vm1825_vm15, %v2608_v28, %v1822_v44  ;;  %v1834_v54 = vmul.f32 %v2612_v45, %v1395_v3 }
 0x22f   : > { %2615 = vrcp.f32 %v1396_v24  ;;  %v1831_v25 = vsel %vm1828_vm1, %v1830_v49, %v1826_v52  ;;  %vm1839_vm2 = vweird.f32 %v2612_v45  ;;  %v1859_v4 = vand.u32 2147483648, %v1396_v24 }
 0x230   : > { %2112 = vst.msk [vmem:[%s3452_s11 + $0x60] sm:$0xff] %vm319_vm0, %v2041_v50  ;;  %2321 = vmatmul.msk.f32.gmra.mxu3 %vm1890_vm5, %v1831_v25  ;;  %v1835_v15 = vsub.f32 1.0, %v1834_v54  ;;  %vm1840_vm4 = vmor %vm1838_vm3, %vm1839_vm2  ;;  %v1857_v51 = vand.u32 2147483647, %v1396_v24  ;;  %vm1853_vm8 = vweird.f32 %v1396_v24 }
 0x231   : > { %v1860_v10 = vor.u32 1.1754944e-38, %v1859_v4 }
 0x232   : > { %v1836_v47 = vmul.f32 %v2612_v45, %v1835_v15  ;;  %vm1858_vm10 = vcmp.eq.f32.partialorder %v1857_v51, 8.507059e+37 }
 0x234   : > { %v2614_v59 = vpop.eup %2613  ;;  %v1837_v42 = vadd.f32 %v2612_v45, %v1836_v47 }
 0x235   : > { %v2616_v46 = vpop.eup %2615  ;;  %v1397_v39 = vadd.f32 1.0, %v2614_v59  ;;  %v2043_v53 = vpop.f32.mrf.mxu2 }
 0x236   : > { %v2044_v61 = vadd.f32 %v3444_v29, %v2043_v53  ;;  %v1841_v62 = vsel %vm1840_vm4, %v2612_v45, %v1837_v42  ;;  %v1849_v63 = vmul.f32 %v2616_v46, %v1396_v24  ;;  %vm1854_vm7 = vweird.f32 %v2616_v46 }
 0x237   : > { %2617 = vrcp.f32 %v1397_v39  ;;  %v1846_v0 = vsel %vm1843_vm6, %v1845_v60, %v1841_v62  ;;  %vm1855_vm9 = vmor %vm1853_vm8, %vm1854_vm7  ;;  %v1874_v1 = vand.u32 2147483648, %v1397_v39  ;;  %v1872_v20 = vand.u32 2147483647, %v1397_v39 }
 0x238   : > { %2113 = vst.msk [vmem:[%s3452_s11 + $0x68] sm:$0xff] %vm319_vm0, %v2044_v61  ;;  %2322 = vmatmul.msk.f32.gmra.mxu3 %vm1890_vm5, %v1846_v0  ;;  %v1850_v2 = vsub.f32 1.0, %v1849_v63  ;;  %vm1868_vm12 = vweird.f32 %v1397_v39 }
 0x239   : > { %v1875_v22 = vor.u32 1.1754944e-38, %v1874_v1  ;;  %vm1873_vm14 = vcmp.eq.f32.partialorder %v1872_v20, 8.507059e+37 }
 0x23a   : > { %v1851_v34 = vmul.f32 %v2616_v46, %v1850_v2 }
 0x23c   : > { %v1852_v35 = vadd.f32 %v2616_v46, %v1851_v34 }
 0x23d   : > { %v2618_v30 = vpop.eup %2617  ;;  %v2046_v8 = vpop.f32.mrf.mxu2 }
 0x23e   : > { %v2047_v11 = vadd.f32 %v3444_v29, %v2046_v8  ;;  %v1856_v13 = vsel %vm1855_vm9, %v2616_v46, %v1852_v35  ;;  %v1864_v14 = vmul.f32 %v2618_v30, %v1397_v39  ;;  %vm1869_vm11 = vweird.f32 %v2618_v30 }
 0x23f   : > { %v1861_v16 = vsel %vm1858_vm10, %v1860_v10, %v1856_v13  ;;  %vm1870_vm13 = vmor %vm1868_vm12, %vm1869_vm11 }
 0x240   : > { %2114 = vst.msk [vmem:[%s3452_s11 + $0x70] sm:$0xff] %vm319_vm0, %v2047_v11  ;;  %2323 = vmatmul.msk.f32.gmra.mxu3 %vm1890_vm5, %v1861_v16  ;;  %v1865_v19 = vsub.f32 1.0, %v1864_v14 }
 0x242   : > { %v1866_v7 = vmul.f32 %v2618_v30, %v1865_v19 }
 0x244   : > { %v1867_v21 = vadd.f32 %v2618_v30, %v1866_v7 }
 0x245   : > { %v2049_v57 = vpop.f32.mrf.mxu2 }
 0x246   : > { %v2050_v5 = vadd.f32 %v3444_v29, %v2049_v57  ;;  %v1871_v12 = vsel %vm1870_vm13, %v2618_v30, %v1867_v21 }
 0x247   : > { %v1876_v56 = vsel %vm1873_vm14, %v1875_v22, %v1871_v12 }
 0x248   : > { %2115 = vst.msk [vmem:[%s3452_s11 + $0x78] sm:$0xff] %vm319_vm0, %v2050_v5  ;;  %2324 = vmatmul.msk.f32.gmra.mxu3 %vm1890_vm5, %v1876_v56 }
 0x24d   : > { %v2052_v9 = vpop.f32.mrf.mxu2 }
 0x24e   : > { %v2053_v27 = vadd.f32 %v3444_v29, %v2052_v9 }
 0x250   : > { %2116 = vst.msk [vmem:[%s3452_s11 + $0x80] sm:$0xff] %vm319_vm0, %v2053_v27 }
 0x255   : > { %v2055_v28 = vpop.f32.mrf.mxu2 }
 0x256   : > { %v2056_v3 = vadd.f32 %v3444_v29, %v2055_v28 }
 0x258   : > { %2117 = vst.msk [vmem:[%s3452_s11 + $0x88] sm:$0xff] %vm319_vm0, %v2056_v3 }
 0x25d   : > { %v2058_v26 = vpop.f32.mrf.mxu2 }
 0x25e   : > { %v2059_v17 = vadd.f32 %v3444_v29, %v2058_v26 }
 0x260   : > { %2118 = vst.msk [vmem:[%s3452_s11 + $0x90] sm:$0xff] %vm319_vm0, %v2059_v17 }
 0x265   : > { %v2061_v18 = vpop.f32.mrf.mxu2 }
 0x266   : > { %v2062_v31 = vadd.f32 %v3444_v29, %v2061_v18 }
 0x268   : > { %2119 = vst.msk [vmem:[%s3452_s11 + $0x98] sm:$0xff] %vm319_vm0, %v2062_v31 }
 0x26d   : > { %v2064_v33 = vpop.f32.mrf.mxu2 }
 0x26e   : > { %v2065_v32 = vadd.f32 %v3444_v29, %v2064_v33 }
 0x270   : > { %2120 = vst.msk [vmem:[%s3452_s11 + $0xa0] sm:$0xff] %vm319_vm0, %v2065_v32 }
 0x275   : > { %v2067_v23 = vpop.f32.mrf.mxu2 }
 0x276   : > { %v2068_v36 = vadd.f32 %v3444_v29, %v2067_v23 }
 0x278   : > { %2121 = vst.msk [vmem:[%s3452_s11 + $0xa8] sm:$0xff] %vm319_vm0, %v2068_v36 }
 0x27d   : > { %v2070_v38 = vpop.f32.mrf.mxu2 }
 0x27e   : > { %v2071_v6 = vadd.f32 %v3444_v29, %v2070_v38 }
 0x280   : > { %2122 = vst.msk [vmem:[%s3452_s11 + $0xb0] sm:$0xff] %vm319_vm0, %v2071_v6 }
 0x289   : > { %v2073_v40 = vpop.f32.mrf.mxu2 }
 0x28a   : > { %v2074_v41 = vadd.f32 %v3444_v29, %v2073_v40 }
 0x28c   : > { %2123 = vst.msk [vmem:[%s3452_s11 + $0xb8] sm:$0xff] %vm319_vm0, %v2074_v41 }
 0x293   : > { %v2076_v43 = vpop.f32.mrf.mxu2 }
 0x294   : > { %v2077_v55 = vadd.f32 %v3444_v29, %v2076_v43 }
 0x296   : > { %2124 = vst.msk [vmem:[%s3452_s11 + $0xc0] sm:$0xff] %vm319_vm0, %v2077_v55 }
 0x29b   : > { %v2079_v44 = vpop.f32.mrf.mxu3 }
 0x29c   : > { %v2080_v45 = vadd.f32 %v3444_v29, %v2079_v44 }
 0x29e   : > { %2125 = vst.msk [vmem:[%s3452_s11 + $0xc8] sm:$0xff] %vm319_vm0, %v2080_v45 }
 0x2a3   : > { %v2082_v24 = vpop.f32.mrf.mxu3 }
 0x2a4   : > { %v2083_v48 = vadd.f32 %v3444_v29, %v2082_v24 }
 0x2a6   : > { %2126 = vst.msk [vmem:[%s3452_s11 + $0xd0] sm:$0xff] %vm319_vm0, %v2083_v48 }
 0x2ab   : > { %v2085_v49 = vpop.f32.mrf.mxu3 }
 0x2ac   : > { %v2086_v50 = vadd.f32 %v3444_v29, %v2085_v49 }
 0x2ae   : > { %2127 = vst.msk [vmem:[%s3452_s11 + $0xd8] sm:$0xff] %vm319_vm0, %v2086_v50 }
 0x2b3   : > { %v2088_v52 = vpop.f32.mrf.mxu3 }
 0x2b4   : > { %v2089_v54 = vadd.f32 %v3444_v29, %v2088_v52 }
 0x2b6   : > { %2128 = vst.msk [vmem:[%s3452_s11 + $0xe0] sm:$0xff] %vm319_vm0, %v2089_v54 }
 0x2bb   : > { %v2091_v25 = vpop.f32.mrf.mxu3 }
 0x2bc   : > { %v2092_v15 = vadd.f32 %v3444_v29, %v2091_v25 }
 0x2be   : > { %2129 = vst.msk [vmem:[%s3452_s11 + $0xe8] sm:$0xff] %vm319_vm0, %v2092_v15 }
 0x2c3   : > { %v2094_v37 = vpop.f32.mrf.mxu3 }
 0x2c4   : > { %v2095_v47 = vadd.f32 %v3444_v29, %v2094_v37 }
 0x2c6   : > { %2130 = vst.msk [vmem:[%s3452_s11 + $0xf0] sm:$0xff] %vm319_vm0, %v2095_v47 }
 0x2cb   : > { %v2097_v58 = vpop.f32.mrf.mxu3 }
 0x2cc   : > { %v2098_v59 = vadd.f32 %v3444_v29, %v2097_v58 }
 0x2ce   : > { %2131 = vst.msk [vmem:[%s3452_s11 + $0xf8] sm:$0xff] %vm319_vm0, %v2098_v59 }
 0x2cf PF: > { %s17_s24 = sadd.s32 1, %s2627_s24  }
 0x2d0   : > { %p14_p4 = scmp.ge.s32.totalorder %s17_s24, 6  }
 0x2d2   :  { %16 = sbr.rel (!%p14_p4) target bundleno = 1 (0x1), region = 78 }

</bundles_post_ra>
